<compile_context>
chip_gen: v5e
topology: v5e:2x2
jax: 0.10.0
libtpu: 0.0.40
codegen_flags: <defaults>
</compile_context>

<pallas_src>
import functools

import jax
import jax.numpy as jnp
from jax.experimental import pallas as pl
from jax.experimental.pallas import tpu as pltpu

CLAMP = 1.0
_OFFSETS = tuple((dy, dx) for dy in range(3) for dx in range(3))  # k = dy*3 + dx


# ---------------------------------------------------------------------------
# Fused kernel (one grid step = nb images packed along lanes):
#   y1 = x1 + F(x2)
#   y2 = x2 * exp(clamp*tanh(H(y1)/2)) + G(y1)
# x_ref   : (C, H+2, Q+2)  halo-padded, lane-packed input slab (Q = nb*(W+2))
# mask_ref: (H, Q)         1.0 at per-image interior columns, 0.0 at per-image halo columns
# out_ref : (C, H, Q)      lane-dense output slab (halo columns are don't-care / stripped)
# pad_ref : (c1, H+2, Q+2) VMEM scratch holding the halo-padded y1 planes for G/H convs
# ---------------------------------------------------------------------------
def _invblock_kernel(x_ref, mask_ref, wF_ref, bF_ref, wG_ref, bG_ref,
                     wH_ref, bH_ref, out_ref, pad_ref, *, c1, c2, H, Q):
    mask = mask_ref[...]                                      # (H, Q)

    # ---- stage 1:  y1 = x1 + F(x2) -----------------------------------------
    acc = [None] * c1
    for ci in range(c2):
        for k, (dy, dx) in enumerate(_OFFSETS):
            # one wide, lane-dense tap slice covering all nb images at once
            sl = x_ref[c1 + ci, dy:dy + H, dx:dx + Q]         # (H, Q)
            for co in range(c1):
                t = wF_ref[(k * c2 + ci) * c1 + co] * sl
                # first tap initialises the accumulator with the bias folded in
                acc[co] = (t + bF_ref[co]) if acc[co] is None else acc[co] + t

    # Zero ONLY the two halo rows of the y1 scratch plane every step (cheap and
    # megacore-safe; everything else in rows 1..H is fully overwritten below).
    zrow = jnp.zeros((1, Q + 2), jnp.float32)
    for co in range(c1):
        pad_ref[co, 0:1, :] = zrow
        pad_ref[co, H + 1:H + 2, :] = zrow

    for co in range(c1):
        y1 = x_ref[co, 1:1 + H, 1:1 + Q] + acc[co]            # x1 read at point of use
        out_ref[co] = y1                                      # lane-dense store
        # mask re-zeroes the per-image halo columns so stage-2 convs see SAME padding
        pad_ref[co, 1:1 + H, 1:1 + Q] = y1 * mask

    # ---- stage 2:  y2 = x2 * exp(s) + G(y1),  s = clamp*tanh(H(y1)/2) ------
    acc_g = [None] * c2
    acc_h = [None] * c2
    for ci in range(c1):
        for k, (dy, dx) in enumerate(_OFFSETS):
            sl = pad_ref[ci, dy:dy + H, dx:dx + Q]            # shared by G and H
            for co in range(c2):
                idx = (k * c1 + ci) * c2 + co
                tg = wG_ref[idx] * sl
                th = wH_ref[idx] * sl
                if acc_g[co] is None:
                    acc_g[co] = tg + bG_ref[co]
                    acc_h[co] = th + bH_ref[co]
                else:
                    acc_g[co] = acc_g[co] + tg
                    acc_h[co] = acc_h[co] + th

    for co in range(c2):
        s = CLAMP * jnp.tanh(0.5 * acc_h[co])                 # == CLAMP*(2*sigmoid-1)
        x2sl = x_ref[c1 + co, 1:1 + H, 1:1 + Q]               # x2 read at point of use
        out_ref[c1 + co] = x2sl * jnp.exp(s) + acc_g[co]


# ---------------------------------------------------------------------------
# pallas_call wrapper: pack -> fused kernel -> unpack (layout plumbing in XLA)
# ---------------------------------------------------------------------------
@functools.partial(jax.jit, static_argnames=("split1", "images_per_block"))
def invblock_exp_forward(x_nchw, params, split1, images_per_block=8):
    wF, bF, wG, bG, wH, bH = params
    N, C, H, W = x_nchw.shape
    c1 = split1
    c2 = C - c1
    nb = min(images_per_block, N)
    assert N % nb == 0, "batch must be divisible by images_per_block"
    n_blocks = N // nb
    Q = nb * (W + 2)            # lane width of the packed slab (per-image halos included)

    # ---- pack to lane-dense, halo-padded layout: (n_blocks*C, H+2, Q+2) ----
    xp = jnp.pad(x_nchw, ((0, 0), (0, 0), (1, 1), (1, 1)))            # (N, C, H+2, W+2)
    xp = xp.reshape(n_blocks, nb, C, H + 2, W + 2).transpose(0, 2, 3, 1, 4)
    xp = xp.reshape(n_blocks, C, H + 2, Q)
    xp = jnp.pad(xp, ((0, 0), (0, 0), (0, 0), (1, 1)))                # +1 col each side
    xp = xp.reshape(n_blocks * C, H + 2, Q + 2)

    # per-image interior-column mask (1 inside each image, 0 at its halo columns)
    col = jnp.arange(Q, dtype=jnp.int32) % (W + 2)
    mask = jnp.broadcast_to(
        ((col >= 1) & (col <= W)).astype(jnp.float32)[None, :], (H, Q))

    # ---- VMEM budget (sized against v7x's 64 MiB per-TC VMEM, with headroom) ----
    in_blk = C * (H + 2) * (Q + 2) * 4
    out_blk = C * H * Q * 4
    mask_blk = H * Q * 4
    scratch_b = c1 * (H + 2) * (Q + 2) * 4
    est = 2 * (in_blk + mask_blk + out_blk) + scratch_b       # double-buffered I/O + scratch
    assert est <= 56 * 1024 * 1024, "reduce images_per_block: tile too big for v7x VMEM"
    vmem_limit = int(min(max(2 * est, 32 * 1024 * 1024), 56 * 1024 * 1024))

    kernel = functools.partial(_invblock_kernel, c1=c1, c2=c2, H=H, Q=Q)
    smem_specs = [pl.BlockSpec(memory_space=pltpu.MemorySpace.SMEM) for _ in range(6)]

    outp = pl.pallas_call(
        kernel,
        out_shape=jax.ShapeDtypeStruct((n_blocks * C, H, Q), jnp.float32),
        grid=(n_blocks,),
        in_specs=[pl.BlockSpec((C, H + 2, Q + 2), lambda g: (g, 0, 0)),
                  pl.BlockSpec((H, Q), lambda g: (0, 0))] + smem_specs,
        out_specs=pl.BlockSpec((C, H, Q), lambda g: (g, 0, 0)),
        scratch_shapes=[pltpu.VMEM((c1, H + 2, Q + 2), jnp.float32)],  # padded y1 planes
        compiler_params=pltpu.CompilerParams(
            dimension_semantics=("parallel",),
            vmem_limit_bytes=vmem_limit),
    )(xp, mask, wF.reshape(-1), bF, wG.reshape(-1), bG, wH.reshape(-1), bH)

    # ---- unpack: strip per-image halo columns, back to NCHW ----
    out = outp.reshape(n_blocks, C, H, nb, W + 2)[..., 1:W + 1]       # (nB, C, H, nb, W)
    out = out.transpose(0, 3, 1, 2, 4).reshape(N, C, H, W)
    return out


# ---------------------------------------------------------------------------
# Parameter init (deterministic, in-script)
# ---------------------------------------------------------------------------
def init_params(key, c1, c2):
    # F: c2 -> c1 ; G: c1 -> c2 ; H: c1 -> c2   (3x3 convs, HWIO weight layout)
    ks = jax.random.split(key, 6)
    wF = 0.1 * jax.random.normal(ks[0], (3, 3, c2, c1), jnp.float32)
    bF = 0.1 * jax.random.normal(ks[1], (c1,), jnp.float32)
    wG = 0.1 * jax.random.normal(ks[2], (3, 3, c1, c2), jnp.float32)
    bG = 0.1 * jax.random.normal(ks[3], (c2,), jnp.float32)
    wH = 0.1 * jax.random.normal(ks[4], (3, 3, c1, c2), jnp.float32)
    bH = 0.1 * jax.random.normal(ks[5], (c2,), jnp.float32)
    return wF, bF, wG, bG, wH, bH


# ---------------------------------------------------------------------------
# Pure-JAX reference (mirrors PyTorch semantics, rev=False, NCHW)
# ---------------------------------------------------------------------------
def _conv3x3_ref(x_nchw, w_hwio, b):
    y = jax.lax.conv_general_dilated(
        x_nchw, w_hwio, window_strides=(1, 1), padding="SAME",
        dimension_numbers=("NCHW", "HWIO", "NCHW"))
    return y + b.reshape(1, -1, 1, 1)


def reference_forward(x_nchw, params, split1):
    wF, bF, wG, bG, wH, bH = params
    c1 = split1
    x1, x2 = x_nchw[:, :c1], x_nchw[:, c1:]
    y1 = x1 + _conv3x3_ref(x2, wF, bF)
    s = CLAMP * (jax.nn.sigmoid(_conv3x3_ref(y1, wH, bH)) * 2.0 - 1.0)
    y2 = x2 * jnp.exp(s) + _conv3x3_ref(y1, wG, bG)
    return jnp.concatenate([y1, y2], axis=1)


# ---------------------------------------------------------------------------
if __name__ == "__main__":
    key = jax.random.PRNGKey(0)
    kx, kp = jax.random.split(key)

    N, C, H, W = 2, 4, 16, 16     # channel_num=4
    split1 = 2                    # channel_split_num=2 -> split_len1=2, split_len2=2
    x = jax.random.normal(kx, (N, C, H, W), jnp.float32)
    params = init_params(kp, c1=split1, c2=C - split1)

    out = invblock_exp_forward(x, params, split1)
    out = jax.block_until_ready(out)

    ref = reference_forward(x, params, split1)
    assert out.shape == (N, C, H, W), out.shape
    err = float(jnp.max(jnp.abs(out - ref)))
    assert jnp.allclose(out, ref, atol=1e-4, rtol=1e-4), err

    print("KERNEL_OK")
</pallas_src>

<mosaic_0001>
module attributes {stable_mosaic.version = 11 : i64} {
  func.func @_invblock_kernel(%arg0: i32, %arg1: memref<4x18x38xf32, #tpu.memory_space<vmem>>, %arg2: memref<16x36xf32, #tpu.memory_space<vmem>>, %arg3: memref<36xf32, #tpu.memory_space<smem>>, %arg4: memref<2xf32, #tpu.memory_space<smem>>, %arg5: memref<36xf32, #tpu.memory_space<smem>>, %arg6: memref<2xf32, #tpu.memory_space<smem>>, %arg7: memref<36xf32, #tpu.memory_space<smem>>, %arg8: memref<2xf32, #tpu.memory_space<smem>>, %arg9: memref<4x16x36xf32, #tpu.memory_space<vmem>>, %arg10: memref<2x18x38xf32, #tpu.memory_space<vmem>>) attributes {dimension_semantics = [#tpu.dimension_semantics<parallel>], iteration_bounds = array<i64: 1>, scalar_prefetch = 0 : i64, scratch_operands = 1 : i64, tpu.core_type = #tpu.core_type<tc>, window_params = [{transform_indices = @transform_0, window_bounds = array<i64: 4, 18, 38>}, {pipeline_mode = #tpu.pipeline_mode<synchronous>, transform_indices = @transform_1, window_bounds = array<i64: 16, 36>}, {transform_indices = @transform_2, window_bounds = array<i64: 36>}, {transform_indices = @transform_3, window_bounds = array<i64: 2>}, {transform_indices = @transform_4, window_bounds = array<i64: 36>}, {transform_indices = @transform_5, window_bounds = array<i64: 2>}, {transform_indices = @transform_6, window_bounds = array<i64: 36>}, {transform_indices = @transform_7, window_bounds = array<i64: 2>}, {transform_indices = @transform_8, window_bounds = array<i64: 4, 16, 36>}]} {
    %c0 = arith.constant 0 : index
    %c0_0 = arith.constant 0 : index
    %0 = vector.load %arg2[%c0, %c0_0] : memref<16x36xf32, #tpu.memory_space<vmem>>, vector<16x36xf32>
    %c2 = arith.constant 2 : index
    %c0_1 = arith.constant 0 : index
    %c0_2 = arith.constant 0 : index
    %1 = vector.load %arg1[%c2, %c0_1, %c0_2] : memref<4x18x38xf32, #tpu.memory_space<vmem>>, vector<1x16x36xf32>
    %2 = vector.shape_cast %1 : vector<1x16x36xf32> to vector<16x36xf32>
    %c0_3 = arith.constant 0 : index
    %3 = memref.load %arg3[%c0_3] : memref<36xf32, #tpu.memory_space<smem>>
    %4 = vector.broadcast %3 : f32 to vector<16x36xf32>
    %5 = arith.mulf %4, %2 : vector<16x36xf32>
    %c0_4 = arith.constant 0 : index
    %6 = memref.load %arg4[%c0_4] : memref<2xf32, #tpu.memory_space<smem>>
    %7 = vector.broadcast %6 : f32 to vector<16x36xf32>
    %8 = arith.addf %5, %7 : vector<16x36xf32>
    %c1 = arith.constant 1 : index
    %9 = memref.load %arg3[%c1] : memref<36xf32, #tpu.memory_space<smem>>
    %10 = vector.broadcast %9 : f32 to vector<16x36xf32>
    %11 = arith.mulf %10, %2 : vector<16x36xf32>
    %c1_5 = arith.constant 1 : index
    %12 = memref.load %arg4[%c1_5] : memref<2xf32, #tpu.memory_space<smem>>
    %13 = vector.broadcast %12 : f32 to vector<16x36xf32>
    %14 = arith.addf %11, %13 : vector<16x36xf32>
    %c2_6 = arith.constant 2 : index
    %c0_7 = arith.constant 0 : index
    %c1_8 = arith.constant 1 : index
    %15 = vector.load %arg1[%c2_6, %c0_7, %c1_8] : memref<4x18x38xf32, #tpu.memory_space<vmem>>, vector<1x16x36xf32>
    %16 = vector.shape_cast %15 : vector<1x16x36xf32> to vector<16x36xf32>
    %c4 = arith.constant 4 : index
    %17 = memref.load %arg3[%c4] : memref<36xf32, #tpu.memory_space<smem>>
    %18 = vector.broadcast %17 : f32 to vector<16x36xf32>
    %19 = arith.mulf %18, %16 : vector<16x36xf32>
    %20 = arith.addf %8, %19 : vector<16x36xf32>
    %c5 = arith.constant 5 : index
    %21 = memref.load %arg3[%c5] : memref<36xf32, #tpu.memory_space<smem>>
    %22 = vector.broadcast %21 : f32 to vector<16x36xf32>
    %23 = arith.mulf %22, %16 : vector<16x36xf32>
    %24 = arith.addf %14, %23 : vector<16x36xf32>
    %c2_9 = arith.constant 2 : index
    %c0_10 = arith.constant 0 : index
    %c2_11 = arith.constant 2 : index
    %25 = vector.load %arg1[%c2_9, %c0_10, %c2_11] : memref<4x18x38xf32, #tpu.memory_space<vmem>>, vector<1x16x36xf32>
    %26 = vector.shape_cast %25 : vector<1x16x36xf32> to vector<16x36xf32>
    %c8 = arith.constant 8 : index
    %27 = memref.load %arg3[%c8] : memref<36xf32, #tpu.memory_space<smem>>
    %28 = vector.broadcast %27 : f32 to vector<16x36xf32>
    %29 = arith.mulf %28, %26 : vector<16x36xf32>
    %30 = arith.addf %20, %29 : vector<16x36xf32>
    %c9 = arith.constant 9 : index
    %31 = memref.load %arg3[%c9] : memref<36xf32, #tpu.memory_space<smem>>
    %32 = vector.broadcast %31 : f32 to vector<16x36xf32>
    %33 = arith.mulf %32, %26 : vector<16x36xf32>
    %34 = arith.addf %24, %33 : vector<16x36xf32>
    %c2_12 = arith.constant 2 : index
    %c1_13 = arith.constant 1 : index
    %c0_14 = arith.constant 0 : index
    %35 = vector.load %arg1[%c2_12, %c1_13, %c0_14] : memref<4x18x38xf32, #tpu.memory_space<vmem>>, vector<1x16x36xf32>
    %36 = vector.shape_cast %35 : vector<1x16x36xf32> to vector<16x36xf32>
    %c12 = arith.constant 12 : index
    %37 = memref.load %arg3[%c12] : memref<36xf32, #tpu.memory_space<smem>>
    %38 = vector.broadcast %37 : f32 to vector<16x36xf32>
    %39 = arith.mulf %38, %36 : vector<16x36xf32>
    %40 = arith.addf %30, %39 : vector<16x36xf32>
    %c13 = arith.constant 13 : index
    %41 = memref.load %arg3[%c13] : memref<36xf32, #tpu.memory_space<smem>>
    %42 = vector.broadcast %41 : f32 to vector<16x36xf32>
    %43 = arith.mulf %42, %36 : vector<16x36xf32>
    %44 = arith.addf %34, %43 : vector<16x36xf32>
    %c2_15 = arith.constant 2 : index
    %c1_16 = arith.constant 1 : index
    %c1_17 = arith.constant 1 : index
    %45 = vector.load %arg1[%c2_15, %c1_16, %c1_17] : memref<4x18x38xf32, #tpu.memory_space<vmem>>, vector<1x16x36xf32>
    %46 = vector.shape_cast %45 : vector<1x16x36xf32> to vector<16x36xf32>
    %c16 = arith.constant 16 : index
    %47 = memref.load %arg3[%c16] : memref<36xf32, #tpu.memory_space<smem>>
    %48 = vector.broadcast %47 : f32 to vector<16x36xf32>
    %49 = arith.mulf %48, %46 : vector<16x36xf32>
    %50 = arith.addf %40, %49 : vector<16x36xf32>
    %c17 = arith.constant 17 : index
    %51 = memref.load %arg3[%c17] : memref<36xf32, #tpu.memory_space<smem>>
    %52 = vector.broadcast %51 : f32 to vector<16x36xf32>
    %53 = arith.mulf %52, %46 : vector<16x36xf32>
    %54 = arith.addf %44, %53 : vector<16x36xf32>
    %c2_18 = arith.constant 2 : index
    %c1_19 = arith.constant 1 : index
    %c2_20 = arith.constant 2 : index
    %55 = vector.load %arg1[%c2_18, %c1_19, %c2_20] : memref<4x18x38xf32, #tpu.memory_space<vmem>>, vector<1x16x36xf32>
    %56 = vector.shape_cast %55 : vector<1x16x36xf32> to vector<16x36xf32>
    %c20 = arith.constant 20 : index
    %57 = memref.load %arg3[%c20] : memref<36xf32, #tpu.memory_space<smem>>
    %58 = vector.broadcast %57 : f32 to vector<16x36xf32>
    %59 = arith.mulf %58, %56 : vector<16x36xf32>
    %60 = arith.addf %50, %59 : vector<16x36xf32>
    %c21 = arith.constant 21 : index
    %61 = memref.load %arg3[%c21] : memref<36xf32, #tpu.memory_space<smem>>
    %62 = vector.broadcast %61 : f32 to vector<16x36xf32>
    %63 = arith.mulf %62, %56 : vector<16x36xf32>
    %64 = arith.addf %54, %63 : vector<16x36xf32>
    %c2_21 = arith.constant 2 : index
    %c2_22 = arith.constant 2 : index
    %c0_23 = arith.constant 0 : index
    %65 = vector.load %arg1[%c2_21, %c2_22, %c0_23] : memref<4x18x38xf32, #tpu.memory_space<vmem>>, vector<1x16x36xf32>
    %66 = vector.shape_cast %65 : vector<1x16x36xf32> to vector<16x36xf32>
    %c24 = arith.constant 24 : index
    %67 = memref.load %arg3[%c24] : memref<36xf32, #tpu.memory_space<smem>>
    %68 = vector.broadcast %67 : f32 to vector<16x36xf32>
    %69 = arith.mulf %68, %66 : vector<16x36xf32>
    %70 = arith.addf %60, %69 : vector<16x36xf32>
    %c25 = arith.constant 25 : index
    %71 = memref.load %arg3[%c25] : memref<36xf32, #tpu.memory_space<smem>>
    %72 = vector.broadcast %71 : f32 to vector<16x36xf32>
    %73 = arith.mulf %72, %66 : vector<16x36xf32>
    %74 = arith.addf %64, %73 : vector<16x36xf32>
    %c2_24 = arith.constant 2 : index
    %c2_25 = arith.constant 2 : index
    %c1_26 = arith.constant 1 : index
    %75 = vector.load %arg1[%c2_24, %c2_25, %c1_26] : memref<4x18x38xf32, #tpu.memory_space<vmem>>, vector<1x16x36xf32>
    %76 = vector.shape_cast %75 : vector<1x16x36xf32> to vector<16x36xf32>
    %c28 = arith.constant 28 : index
    %77 = memref.load %arg3[%c28] : memref<36xf32, #tpu.memory_space<smem>>
    %78 = vector.broadcast %77 : f32 to vector<16x36xf32>
    %79 = arith.mulf %78, %76 : vector<16x36xf32>
    %80 = arith.addf %70, %79 : vector<16x36xf32>
    %c29 = arith.constant 29 : index
    %81 = memref.load %arg3[%c29] : memref<36xf32, #tpu.memory_space<smem>>
    %82 = vector.broadcast %81 : f32 to vector<16x36xf32>
    %83 = arith.mulf %82, %76 : vector<16x36xf32>
    %84 = arith.addf %74, %83 : vector<16x36xf32>
    %c2_27 = arith.constant 2 : index
    %c2_28 = arith.constant 2 : index
    %c2_29 = arith.constant 2 : index
    %85 = vector.load %arg1[%c2_27, %c2_28, %c2_29] : memref<4x18x38xf32, #tpu.memory_space<vmem>>, vector<1x16x36xf32>
    %86 = vector.shape_cast %85 : vector<1x16x36xf32> to vector<16x36xf32>
    %c32 = arith.constant 32 : index
    %87 = memref.load %arg3[%c32] : memref<36xf32, #tpu.memory_space<smem>>
    %88 = vector.broadcast %87 : f32 to vector<16x36xf32>
    %89 = arith.mulf %88, %86 : vector<16x36xf32>
    %90 = arith.addf %80, %89 : vector<16x36xf32>
    %c33 = arith.constant 33 : index
    %91 = memref.load %arg3[%c33] : memref<36xf32, #tpu.memory_space<smem>>
    %92 = vector.broadcast %91 : f32 to vector<16x36xf32>
    %93 = arith.mulf %92, %86 : vector<16x36xf32>
    %94 = arith.addf %84, %93 : vector<16x36xf32>
    %c3 = arith.constant 3 : index
    %c0_30 = arith.constant 0 : index
    %c0_31 = arith.constant 0 : index
    %95 = vector.load %arg1[%c3, %c0_30, %c0_31] : memref<4x18x38xf32, #tpu.memory_space<vmem>>, vector<1x16x36xf32>
    %96 = vector.shape_cast %95 : vector<1x16x36xf32> to vector<16x36xf32>
    %c2_32 = arith.constant 2 : index
    %97 = memref.load %arg3[%c2_32] : memref<36xf32, #tpu.memory_space<smem>>
    %98 = vector.broadcast %97 : f32 to vector<16x36xf32>
    %99 = arith.mulf %98, %96 : vector<16x36xf32>
    %100 = arith.addf %90, %99 : vector<16x36xf32>
    %c3_33 = arith.constant 3 : index
    %101 = memref.load %arg3[%c3_33] : memref<36xf32, #tpu.memory_space<smem>>
    %102 = vector.broadcast %101 : f32 to vector<16x36xf32>
    %103 = arith.mulf %102, %96 : vector<16x36xf32>
    %104 = arith.addf %94, %103 : vector<16x36xf32>
    %c3_34 = arith.constant 3 : index
    %c0_35 = arith.constant 0 : index
    %c1_36 = arith.constant 1 : index
    %105 = vector.load %arg1[%c3_34, %c0_35, %c1_36] : memref<4x18x38xf32, #tpu.memory_space<vmem>>, vector<1x16x36xf32>
    %106 = vector.shape_cast %105 : vector<1x16x36xf32> to vector<16x36xf32>
    %c6 = arith.constant 6 : index
    %107 = memref.load %arg3[%c6] : memref<36xf32, #tpu.memory_space<smem>>
    %108 = vector.broadcast %107 : f32 to vector<16x36xf32>
    %109 = arith.mulf %108, %106 : vector<16x36xf32>
    %110 = arith.addf %100, %109 : vector<16x36xf32>
    %c7 = arith.constant 7 : index
    %111 = memref.load %arg3[%c7] : memref<36xf32, #tpu.memory_space<smem>>
    %112 = vector.broadcast %111 : f32 to vector<16x36xf32>
    %113 = arith.mulf %112, %106 : vector<16x36xf32>
    %114 = arith.addf %104, %113 : vector<16x36xf32>
    %c3_37 = arith.constant 3 : index
    %c0_38 = arith.constant 0 : index
    %c2_39 = arith.constant 2 : index
    %115 = vector.load %arg1[%c3_37, %c0_38, %c2_39] : memref<4x18x38xf32, #tpu.memory_space<vmem>>, vector<1x16x36xf32>
    %116 = vector.shape_cast %115 : vector<1x16x36xf32> to vector<16x36xf32>
    %c10 = arith.constant 10 : index
    %117 = memref.load %arg3[%c10] : memref<36xf32, #tpu.memory_space<smem>>
    %118 = vector.broadcast %117 : f32 to vector<16x36xf32>
    %119 = arith.mulf %118, %116 : vector<16x36xf32>
    %120 = arith.addf %110, %119 : vector<16x36xf32>
    %c11 = arith.constant 11 : index
    %121 = memref.load %arg3[%c11] : memref<36xf32, #tpu.memory_space<smem>>
    %122 = vector.broadcast %121 : f32 to vector<16x36xf32>
    %123 = arith.mulf %122, %116 : vector<16x36xf32>
    %124 = arith.addf %114, %123 : vector<16x36xf32>
    %c3_40 = arith.constant 3 : index
    %c1_41 = arith.constant 1 : index
    %c0_42 = arith.constant 0 : index
    %125 = vector.load %arg1[%c3_40, %c1_41, %c0_42] : memref<4x18x38xf32, #tpu.memory_space<vmem>>, vector<1x16x36xf32>
    %126 = vector.shape_cast %125 : vector<1x16x36xf32> to vector<16x36xf32>
    %c14 = arith.constant 14 : index
    %127 = memref.load %arg3[%c14] : memref<36xf32, #tpu.memory_space<smem>>
    %128 = vector.broadcast %127 : f32 to vector<16x36xf32>
    %129 = arith.mulf %128, %126 : vector<16x36xf32>
    %130 = arith.addf %120, %129 : vector<16x36xf32>
    %c15 = arith.constant 15 : index
    %131 = memref.load %arg3[%c15] : memref<36xf32, #tpu.memory_space<smem>>
    %132 = vector.broadcast %131 : f32 to vector<16x36xf32>
    %133 = arith.mulf %132, %126 : vector<16x36xf32>
    %134 = arith.addf %124, %133 : vector<16x36xf32>
    %c3_43 = arith.constant 3 : index
    %c1_44 = arith.constant 1 : index
    %c1_45 = arith.constant 1 : index
    %135 = vector.load %arg1[%c3_43, %c1_44, %c1_45] : memref<4x18x38xf32, #tpu.memory_space<vmem>>, vector<1x16x36xf32>
    %136 = vector.shape_cast %135 : vector<1x16x36xf32> to vector<16x36xf32>
    %c18 = arith.constant 18 : index
    %137 = memref.load %arg3[%c18] : memref<36xf32, #tpu.memory_space<smem>>
    %138 = vector.broadcast %137 : f32 to vector<16x36xf32>
    %139 = arith.mulf %138, %136 : vector<16x36xf32>
    %140 = arith.addf %130, %139 : vector<16x36xf32>
    %c19 = arith.constant 19 : index
    %141 = memref.load %arg3[%c19] : memref<36xf32, #tpu.memory_space<smem>>
    %142 = vector.broadcast %141 : f32 to vector<16x36xf32>
    %143 = arith.mulf %142, %136 : vector<16x36xf32>
    %144 = arith.addf %134, %143 : vector<16x36xf32>
    %c3_46 = arith.constant 3 : index
    %c1_47 = arith.constant 1 : index
    %c2_48 = arith.constant 2 : index
    %145 = vector.load %arg1[%c3_46, %c1_47, %c2_48] : memref<4x18x38xf32, #tpu.memory_space<vmem>>, vector<1x16x36xf32>
    %146 = vector.shape_cast %145 : vector<1x16x36xf32> to vector<16x36xf32>
    %c22 = arith.constant 22 : index
    %147 = memref.load %arg3[%c22] : memref<36xf32, #tpu.memory_space<smem>>
    %148 = vector.broadcast %147 : f32 to vector<16x36xf32>
    %149 = arith.mulf %148, %146 : vector<16x36xf32>
    %150 = arith.addf %140, %149 : vector<16x36xf32>
    %c23 = arith.constant 23 : index
    %151 = memref.load %arg3[%c23] : memref<36xf32, #tpu.memory_space<smem>>
    %152 = vector.broadcast %151 : f32 to vector<16x36xf32>
    %153 = arith.mulf %152, %146 : vector<16x36xf32>
    %154 = arith.addf %144, %153 : vector<16x36xf32>
    %c3_49 = arith.constant 3 : index
    %c2_50 = arith.constant 2 : index
    %c0_51 = arith.constant 0 : index
    %155 = vector.load %arg1[%c3_49, %c2_50, %c0_51] : memref<4x18x38xf32, #tpu.memory_space<vmem>>, vector<1x16x36xf32>
    %156 = vector.shape_cast %155 : vector<1x16x36xf32> to vector<16x36xf32>
    %c26 = arith.constant 26 : index
    %157 = memref.load %arg3[%c26] : memref<36xf32, #tpu.memory_space<smem>>
    %158 = vector.broadcast %157 : f32 to vector<16x36xf32>
    %159 = arith.mulf %158, %156 : vector<16x36xf32>
    %160 = arith.addf %150, %159 : vector<16x36xf32>
    %c27 = arith.constant 27 : index
    %161 = memref.load %arg3[%c27] : memref<36xf32, #tpu.memory_space<smem>>
    %162 = vector.broadcast %161 : f32 to vector<16x36xf32>
    %163 = arith.mulf %162, %156 : vector<16x36xf32>
    %164 = arith.addf %154, %163 : vector<16x36xf32>
    %c3_52 = arith.constant 3 : index
    %c2_53 = arith.constant 2 : index
    %c1_54 = arith.constant 1 : index
    %165 = vector.load %arg1[%c3_52, %c2_53, %c1_54] : memref<4x18x38xf32, #tpu.memory_space<vmem>>, vector<1x16x36xf32>
    %166 = vector.shape_cast %165 : vector<1x16x36xf32> to vector<16x36xf32>
    %c30 = arith.constant 30 : index
    %167 = memref.load %arg3[%c30] : memref<36xf32, #tpu.memory_space<smem>>
    %168 = vector.broadcast %167 : f32 to vector<16x36xf32>
    %169 = arith.mulf %168, %166 : vector<16x36xf32>
    %170 = arith.addf %160, %169 : vector<16x36xf32>
    %c31 = arith.constant 31 : index
    %171 = memref.load %arg3[%c31] : memref<36xf32, #tpu.memory_space<smem>>
    %172 = vector.broadcast %171 : f32 to vector<16x36xf32>
    %173 = arith.mulf %172, %166 : vector<16x36xf32>
    %174 = arith.addf %164, %173 : vector<16x36xf32>
    %c3_55 = arith.constant 3 : index
    %c2_56 = arith.constant 2 : index
    %c2_57 = arith.constant 2 : index
    %175 = vector.load %arg1[%c3_55, %c2_56, %c2_57] : memref<4x18x38xf32, #tpu.memory_space<vmem>>, vector<1x16x36xf32>
    %176 = vector.shape_cast %175 : vector<1x16x36xf32> to vector<16x36xf32>
    %c34 = arith.constant 34 : index
    %177 = memref.load %arg3[%c34] : memref<36xf32, #tpu.memory_space<smem>>
    %178 = vector.broadcast %177 : f32 to vector<16x36xf32>
    %179 = arith.mulf %178, %176 : vector<16x36xf32>
    %180 = arith.addf %170, %179 : vector<16x36xf32>
    %c35 = arith.constant 35 : index
    %181 = memref.load %arg3[%c35] : memref<36xf32, #tpu.memory_space<smem>>
    %182 = vector.broadcast %181 : f32 to vector<16x36xf32>
    %183 = arith.mulf %182, %176 : vector<16x36xf32>
    %184 = arith.addf %174, %183 : vector<16x36xf32>
    %cst = arith.constant 0.000000e+00 : f32
    %185 = vector.broadcast %cst : f32 to vector<1x38xf32>
    %c0_58 = arith.constant 0 : index
    %c0_59 = arith.constant 0 : index
    %c0_60 = arith.constant 0 : index
    %186 = vector.load %arg10[%c0_58, %c0_59, %c0_60] : memref<2x18x38xf32, #tpu.memory_space<vmem>>, vector<1x1x38xf32>
    %187 = vector.shape_cast %186 : vector<1x1x38xf32> to vector<1x38xf32>
    %188 = vector.shape_cast %185 : vector<1x38xf32> to vector<1x1x38xf32>
    tpu.vector_store %arg10[%c0_58, %c0_59, %c0_60], %188 {strides = array<i32>} : memref<2x18x38xf32, #tpu.memory_space<vmem>>, vector<1x1x38xf32>,
    %c0_61 = arith.constant 0 : index
    %c17_62 = arith.constant 17 : index
    %c0_63 = arith.constant 0 : index
    %189 = vector.load %arg10[%c0_61, %c17_62, %c0_63] : memref<2x18x38xf32, #tpu.memory_space<vmem>>, vector<1x1x38xf32>
    %190 = vector.shape_cast %189 : vector<1x1x38xf32> to vector<1x38xf32>
    %191 = vector.shape_cast %185 : vector<1x38xf32> to vector<1x1x38xf32>
    tpu.vector_store %arg10[%c0_61, %c17_62, %c0_63], %191 {strides = array<i32>} : memref<2x18x38xf32, #tpu.memory_space<vmem>>, vector<1x1x38xf32>,
    %c1_64 = arith.constant 1 : index
    %c0_65 = arith.constant 0 : index
    %c0_66 = arith.constant 0 : index
    %192 = vector.load %arg10[%c1_64, %c0_65, %c0_66] : memref<2x18x38xf32, #tpu.memory_space<vmem>>, vector<1x1x38xf32>
    %193 = vector.shape_cast %192 : vector<1x1x38xf32> to vector<1x38xf32>
    %194 = vector.shape_cast %185 : vector<1x38xf32> to vector<1x1x38xf32>
    tpu.vector_store %arg10[%c1_64, %c0_65, %c0_66], %194 {strides = array<i32>} : memref<2x18x38xf32, #tpu.memory_space<vmem>>, vector<1x1x38xf32>,
    %c1_67 = arith.constant 1 : index
    %c17_68 = arith.constant 17 : index
    %c0_69 = arith.constant 0 : index
    %195 = vector.load %arg10[%c1_67, %c17_68, %c0_69] : memref<2x18x38xf32, #tpu.memory_space<vmem>>, vector<1x1x38xf32>
    %196 = vector.shape_cast %195 : vector<1x1x38xf32> to vector<1x38xf32>
    %197 = vector.shape_cast %185 : vector<1x38xf32> to vector<1x1x38xf32>
    tpu.vector_store %arg10[%c1_67, %c17_68, %c0_69], %197 {strides = array<i32>} : memref<2x18x38xf32, #tpu.memory_space<vmem>>, vector<1x1x38xf32>,
    %c0_70 = arith.constant 0 : index
    %c1_71 = arith.constant 1 : index
    %c1_72 = arith.constant 1 : index
    %198 = vector.load %arg1[%c0_70, %c1_71, %c1_72] : memref<4x18x38xf32, #tpu.memory_space<vmem>>, vector<1x16x36xf32>
    %199 = vector.shape_cast %198 : vector<1x16x36xf32> to vector<16x36xf32>
    %200 = arith.addf %199, %180 : vector<16x36xf32>
    %c0_73 = arith.constant 0 : index
    %c0_74 = arith.constant 0 : index
    %c0_75 = arith.constant 0 : index
    %201 = vector.load %arg9[%c0_73, %c0_74, %c0_75] : memref<4x16x36xf32, #tpu.memory_space<vmem>>, vector<1x16x36xf32>
    %202 = vector.shape_cast %201 : vector<1x16x36xf32> to vector<16x36xf32>
    %203 = vector.shape_cast %200 : vector<16x36xf32> to vector<1x16x36xf32>
    tpu.vector_store %arg9[%c0_73, %c0_74, %c0_75], %203 {strides = array<i32>} : memref<4x16x36xf32, #tpu.memory_space<vmem>>, vector<1x16x36xf32>,
    %204 = arith.mulf %200, %0 : vector<16x36xf32>
    %c0_76 = arith.constant 0 : index
    %c1_77 = arith.constant 1 : index
    %c1_78 = arith.constant 1 : index
    %205 = vector.load %arg10[%c0_76, %c1_77, %c1_78] : memref<2x18x38xf32, #tpu.memory_space<vmem>>, vector<1x16x36xf32>
    %206 = vector.shape_cast %205 : vector<1x16x36xf32> to vector<16x36xf32>
    %207 = vector.shape_cast %204 : vector<16x36xf32> to vector<1x16x36xf32>
    tpu.vector_store %arg10[%c0_76, %c1_77, %c1_78], %207 {strides = array<i32>} : memref<2x18x38xf32, #tpu.memory_space<vmem>>, vector<1x16x36xf32>,
    %c1_79 = arith.constant 1 : index
    %c1_80 = arith.constant 1 : index
    %c1_81 = arith.constant 1 : index
    %208 = vector.load %arg1[%c1_79, %c1_80, %c1_81] : memref<4x18x38xf32, #tpu.memory_space<vmem>>, vector<1x16x36xf32>
    %209 = vector.shape_cast %208 : vector<1x16x36xf32> to vector<16x36xf32>
    %210 = arith.addf %209, %184 : vector<16x36xf32>
    %c1_82 = arith.constant 1 : index
    %c0_83 = arith.constant 0 : index
    %c0_84 = arith.constant 0 : index
    %211 = vector.load %arg9[%c1_82, %c0_83, %c0_84] : memref<4x16x36xf32, #tpu.memory_space<vmem>>, vector<1x16x36xf32>
    %212 = vector.shape_cast %211 : vector<1x16x36xf32> to vector<16x36xf32>
    %213 = vector.shape_cast %210 : vector<16x36xf32> to vector<1x16x36xf32>
    tpu.vector_store %arg9[%c1_82, %c0_83, %c0_84], %213 {strides = array<i32>} : memref<4x16x36xf32, #tpu.memory_space<vmem>>, vector<1x16x36xf32>,
    %214 = arith.mulf %210, %0 : vector<16x36xf32>
    %c1_85 = arith.constant 1 : index
    %c1_86 = arith.constant 1 : index
    %c1_87 = arith.constant 1 : index
    %215 = vector.load %arg10[%c1_85, %c1_86, %c1_87] : memref<2x18x38xf32, #tpu.memory_space<vmem>>, vector<1x16x36xf32>
    %216 = vector.shape_cast %215 : vector<1x16x36xf32> to vector<16x36xf32>
    %217 = vector.shape_cast %214 : vector<16x36xf32> to vector<1x16x36xf32>
    tpu.vector_store %arg10[%c1_85, %c1_86, %c1_87], %217 {strides = array<i32>} : memref<2x18x38xf32, #tpu.memory_space<vmem>>, vector<1x16x36xf32>,
    %c0_88 = arith.constant 0 : index
    %c0_89 = arith.constant 0 : index
    %c0_90 = arith.constant 0 : index
    %218 = vector.load %arg10[%c0_88, %c0_89, %c0_90] : memref<2x18x38xf32, #tpu.memory_space<vmem>>, vector<1x16x36xf32>
    %219 = vector.shape_cast %218 : vector<1x16x36xf32> to vector<16x36xf32>
    %c0_91 = arith.constant 0 : index
    %220 = memref.load %arg5[%c0_91] : memref<36xf32, #tpu.memory_space<smem>>
    %221 = vector.broadcast %220 : f32 to vector<16x36xf32>
    %222 = arith.mulf %221, %219 : vector<16x36xf32>
    %c0_92 = arith.constant 0 : index
    %223 = memref.load %arg7[%c0_92] : memref<36xf32, #tpu.memory_space<smem>>
    %224 = vector.broadcast %223 : f32 to vector<16x36xf32>
    %225 = arith.mulf %224, %219 : vector<16x36xf32>
    %c0_93 = arith.constant 0 : index
    %226 = memref.load %arg6[%c0_93] : memref<2xf32, #tpu.memory_space<smem>>
    %227 = vector.broadcast %226 : f32 to vector<16x36xf32>
    %228 = arith.addf %222, %227 : vector<16x36xf32>
    %c0_94 = arith.constant 0 : index
    %229 = memref.load %arg8[%c0_94] : memref<2xf32, #tpu.memory_space<smem>>
    %230 = vector.broadcast %229 : f32 to vector<16x36xf32>
    %231 = arith.addf %225, %230 : vector<16x36xf32>
    %c1_95 = arith.constant 1 : index
    %232 = memref.load %arg5[%c1_95] : memref<36xf32, #tpu.memory_space<smem>>
    %233 = vector.broadcast %232 : f32 to vector<16x36xf32>
    %234 = arith.mulf %233, %219 : vector<16x36xf32>
    %c1_96 = arith.constant 1 : index
    %235 = memref.load %arg7[%c1_96] : memref<36xf32, #tpu.memory_space<smem>>
    %236 = vector.broadcast %235 : f32 to vector<16x36xf32>
    %237 = arith.mulf %236, %219 : vector<16x36xf32>
    %c1_97 = arith.constant 1 : index
    %238 = memref.load %arg6[%c1_97] : memref<2xf32, #tpu.memory_space<smem>>
    %239 = vector.broadcast %238 : f32 to vector<16x36xf32>
    %240 = arith.addf %234, %239 : vector<16x36xf32>
    %c1_98 = arith.constant 1 : index
    %241 = memref.load %arg8[%c1_98] : memref<2xf32, #tpu.memory_space<smem>>
    %242 = vector.broadcast %241 : f32 to vector<16x36xf32>
    %243 = arith.addf %237, %242 : vector<16x36xf32>
    %c0_99 = arith.constant 0 : index
    %c0_100 = arith.constant 0 : index
    %c1_101 = arith.constant 1 : index
    %244 = vector.load %arg10[%c0_99, %c0_100, %c1_101] : memref<2x18x38xf32, #tpu.memory_space<vmem>>, vector<1x16x36xf32>
    %245 = vector.shape_cast %244 : vector<1x16x36xf32> to vector<16x36xf32>
    %c4_102 = arith.constant 4 : index
    %246 = memref.load %arg5[%c4_102] : memref<36xf32, #tpu.memory_space<smem>>
    %247 = vector.broadcast %246 : f32 to vector<16x36xf32>
    %248 = arith.mulf %247, %245 : vector<16x36xf32>
    %c4_103 = arith.constant 4 : index
    %249 = memref.load %arg7[%c4_103] : memref<36xf32, #tpu.memory_space<smem>>
    %250 = vector.broadcast %249 : f32 to vector<16x36xf32>
    %251 = arith.mulf %250, %245 : vector<16x36xf32>
    %252 = arith.addf %228, %248 : vector<16x36xf32>
    %253 = arith.addf %231, %251 : vector<16x36xf32>
    %c5_104 = arith.constant 5 : index
    %254 = memref.load %arg5[%c5_104] : memref<36xf32, #tpu.memory_space<smem>>
    %255 = vector.broadcast %254 : f32 to vector<16x36xf32>
    %256 = arith.mulf %255, %245 : vector<16x36xf32>
    %c5_105 = arith.constant 5 : index
    %257 = memref.load %arg7[%c5_105] : memref<36xf32, #tpu.memory_space<smem>>
    %258 = vector.broadcast %257 : f32 to vector<16x36xf32>
    %259 = arith.mulf %258, %245 : vector<16x36xf32>
    %260 = arith.addf %240, %256 : vector<16x36xf32>
    %261 = arith.addf %243, %259 : vector<16x36xf32>
    %c0_106 = arith.constant 0 : index
    %c0_107 = arith.constant 0 : index
    %c2_108 = arith.constant 2 : index
    %262 = vector.load %arg10[%c0_106, %c0_107, %c2_108] : memref<2x18x38xf32, #tpu.memory_space<vmem>>, vector<1x16x36xf32>
    %263 = vector.shape_cast %262 : vector<1x16x36xf32> to vector<16x36xf32>
    %c8_109 = arith.constant 8 : index
    %264 = memref.load %arg5[%c8_109] : memref<36xf32, #tpu.memory_space<smem>>
    %265 = vector.broadcast %264 : f32 to vector<16x36xf32>
    %266 = arith.mulf %265, %263 : vector<16x36xf32>
    %c8_110 = arith.constant 8 : index
    %267 = memref.load %arg7[%c8_110] : memref<36xf32, #tpu.memory_space<smem>>
    %268 = vector.broadcast %267 : f32 to vector<16x36xf32>
    %269 = arith.mulf %268, %263 : vector<16x36xf32>
    %270 = arith.addf %252, %266 : vector<16x36xf32>
    %271 = arith.addf %253, %269 : vector<16x36xf32>
    %c9_111 = arith.constant 9 : index
    %272 = memref.load %arg5[%c9_111] : memref<36xf32, #tpu.memory_space<smem>>
    %273 = vector.broadcast %272 : f32 to vector<16x36xf32>
    %274 = arith.mulf %273, %263 : vector<16x36xf32>
    %c9_112 = arith.constant 9 : index
    %275 = memref.load %arg7[%c9_112] : memref<36xf32, #tpu.memory_space<smem>>
    %276 = vector.broadcast %275 : f32 to vector<16x36xf32>
    %277 = arith.mulf %276, %263 : vector<16x36xf32>
    %278 = arith.addf %260, %274 : vector<16x36xf32>
    %279 = arith.addf %261, %277 : vector<16x36xf32>
    %c0_113 = arith.constant 0 : index
    %c1_114 = arith.constant 1 : index
    %c0_115 = arith.constant 0 : index
    %280 = vector.load %arg10[%c0_113, %c1_114, %c0_115] : memref<2x18x38xf32, #tpu.memory_space<vmem>>, vector<1x16x36xf32>
    %281 = vector.shape_cast %280 : vector<1x16x36xf32> to vector<16x36xf32>
    %c12_116 = arith.constant 12 : index
    %282 = memref.load %arg5[%c12_116] : memref<36xf32, #tpu.memory_space<smem>>
    %283 = vector.broadcast %282 : f32 to vector<16x36xf32>
    %284 = arith.mulf %283, %281 : vector<16x36xf32>
    %c12_117 = arith.constant 12 : index
    %285 = memref.load %arg7[%c12_117] : memref<36xf32, #tpu.memory_space<smem>>
    %286 = vector.broadcast %285 : f32 to vector<16x36xf32>
    %287 = arith.mulf %286, %281 : vector<16x36xf32>
    %288 = arith.addf %270, %284 : vector<16x36xf32>
    %289 = arith.addf %271, %287 : vector<16x36xf32>
    %c13_118 = arith.constant 13 : index
    %290 = memref.load %arg5[%c13_118] : memref<36xf32, #tpu.memory_space<smem>>
    %291 = vector.broadcast %290 : f32 to vector<16x36xf32>
    %292 = arith.mulf %291, %281 : vector<16x36xf32>
    %c13_119 = arith.constant 13 : index
    %293 = memref.load %arg7[%c13_119] : memref<36xf32, #tpu.memory_space<smem>>
    %294 = vector.broadcast %293 : f32 to vector<16x36xf32>
    %295 = arith.mulf %294, %281 : vector<16x36xf32>
    %296 = arith.addf %278, %292 : vector<16x36xf32>
    %297 = arith.addf %279, %295 : vector<16x36xf32>
    %c0_120 = arith.constant 0 : index
    %c1_121 = arith.constant 1 : index
    %c1_122 = arith.constant 1 : index
    %298 = vector.load %arg10[%c0_120, %c1_121, %c1_122] : memref<2x18x38xf32, #tpu.memory_space<vmem>>, vector<1x16x36xf32>
    %299 = vector.shape_cast %298 : vector<1x16x36xf32> to vector<16x36xf32>
    %c16_123 = arith.constant 16 : index
    %300 = memref.load %arg5[%c16_123] : memref<36xf32, #tpu.memory_space<smem>>
    %301 = vector.broadcast %300 : f32 to vector<16x36xf32>
    %302 = arith.mulf %301, %299 : vector<16x36xf32>
    %c16_124 = arith.constant 16 : index
    %303 = memref.load %arg7[%c16_124] : memref<36xf32, #tpu.memory_space<smem>>
    %304 = vector.broadcast %303 : f32 to vector<16x36xf32>
    %305 = arith.mulf %304, %299 : vector<16x36xf32>
    %306 = arith.addf %288, %302 : vector<16x36xf32>
    %307 = arith.addf %289, %305 : vector<16x36xf32>
    %c17_125 = arith.constant 17 : index
    %308 = memref.load %arg5[%c17_125] : memref<36xf32, #tpu.memory_space<smem>>
    %309 = vector.broadcast %308 : f32 to vector<16x36xf32>
    %310 = arith.mulf %309, %299 : vector<16x36xf32>
    %c17_126 = arith.constant 17 : index
    %311 = memref.load %arg7[%c17_126] : memref<36xf32, #tpu.memory_space<smem>>
    %312 = vector.broadcast %311 : f32 to vector<16x36xf32>
    %313 = arith.mulf %312, %299 : vector<16x36xf32>
    %314 = arith.addf %296, %310 : vector<16x36xf32>
    %315 = arith.addf %297, %313 : vector<16x36xf32>
    %c0_127 = arith.constant 0 : index
    %c1_128 = arith.constant 1 : index
    %c2_129 = arith.constant 2 : index
    %316 = vector.load %arg10[%c0_127, %c1_128, %c2_129] : memref<2x18x38xf32, #tpu.memory_space<vmem>>, vector<1x16x36xf32>
    %317 = vector.shape_cast %316 : vector<1x16x36xf32> to vector<16x36xf32>
    %c20_130 = arith.constant 20 : index
    %318 = memref.load %arg5[%c20_130] : memref<36xf32, #tpu.memory_space<smem>>
    %319 = vector.broadcast %318 : f32 to vector<16x36xf32>
    %320 = arith.mulf %319, %317 : vector<16x36xf32>
    %c20_131 = arith.constant 20 : index
    %321 = memref.load %arg7[%c20_131] : memref<36xf32, #tpu.memory_space<smem>>
    %322 = vector.broadcast %321 : f32 to vector<16x36xf32>
    %323 = arith.mulf %322, %317 : vector<16x36xf32>
    %324 = arith.addf %306, %320 : vector<16x36xf32>
    %325 = arith.addf %307, %323 : vector<16x36xf32>
    %c21_132 = arith.constant 21 : index
    %326 = memref.load %arg5[%c21_132] : memref<36xf32, #tpu.memory_space<smem>>
    %327 = vector.broadcast %326 : f32 to vector<16x36xf32>
    %328 = arith.mulf %327, %317 : vector<16x36xf32>
    %c21_133 = arith.constant 21 : index
    %329 = memref.load %arg7[%c21_133] : memref<36xf32, #tpu.memory_space<smem>>
    %330 = vector.broadcast %329 : f32 to vector<16x36xf32>
    %331 = arith.mulf %330, %317 : vector<16x36xf32>
    %332 = arith.addf %314, %328 : vector<16x36xf32>
    %333 = arith.addf %315, %331 : vector<16x36xf32>
    %c0_134 = arith.constant 0 : index
    %c2_135 = arith.constant 2 : index
    %c0_136 = arith.constant 0 : index
    %334 = vector.load %arg10[%c0_134, %c2_135, %c0_136] : memref<2x18x38xf32, #tpu.memory_space<vmem>>, vector<1x16x36xf32>
    %335 = vector.shape_cast %334 : vector<1x16x36xf32> to vector<16x36xf32>
    %c24_137 = arith.constant 24 : index
    %336 = memref.load %arg5[%c24_137] : memref<36xf32, #tpu.memory_space<smem>>
    %337 = vector.broadcast %336 : f32 to vector<16x36xf32>
    %338 = arith.mulf %337, %335 : vector<16x36xf32>
    %c24_138 = arith.constant 24 : index
    %339 = memref.load %arg7[%c24_138] : memref<36xf32, #tpu.memory_space<smem>>
    %340 = vector.broadcast %339 : f32 to vector<16x36xf32>
    %341 = arith.mulf %340, %335 : vector<16x36xf32>
    %342 = arith.addf %324, %338 : vector<16x36xf32>
    %343 = arith.addf %325, %341 : vector<16x36xf32>
    %c25_139 = arith.constant 25 : index
    %344 = memref.load %arg5[%c25_139] : memref<36xf32, #tpu.memory_space<smem>>
    %345 = vector.broadcast %344 : f32 to vector<16x36xf32>
    %346 = arith.mulf %345, %335 : vector<16x36xf32>
    %c25_140 = arith.constant 25 : index
    %347 = memref.load %arg7[%c25_140] : memref<36xf32, #tpu.memory_space<smem>>
    %348 = vector.broadcast %347 : f32 to vector<16x36xf32>
    %349 = arith.mulf %348, %335 : vector<16x36xf32>
    %350 = arith.addf %332, %346 : vector<16x36xf32>
    %351 = arith.addf %333, %349 : vector<16x36xf32>
    %c0_141 = arith.constant 0 : index
    %c2_142 = arith.constant 2 : index
    %c1_143 = arith.constant 1 : index
    %352 = vector.load %arg10[%c0_141, %c2_142, %c1_143] : memref<2x18x38xf32, #tpu.memory_space<vmem>>, vector<1x16x36xf32>
    %353 = vector.shape_cast %352 : vector<1x16x36xf32> to vector<16x36xf32>
    %c28_144 = arith.constant 28 : index
    %354 = memref.load %arg5[%c28_144] : memref<36xf32, #tpu.memory_space<smem>>
    %355 = vector.broadcast %354 : f32 to vector<16x36xf32>
    %356 = arith.mulf %355, %353 : vector<16x36xf32>
    %c28_145 = arith.constant 28 : index
    %357 = memref.load %arg7[%c28_145] : memref<36xf32, #tpu.memory_space<smem>>
    %358 = vector.broadcast %357 : f32 to vector<16x36xf32>
    %359 = arith.mulf %358, %353 : vector<16x36xf32>
    %360 = arith.addf %342, %356 : vector<16x36xf32>
    %361 = arith.addf %343, %359 : vector<16x36xf32>
    %c29_146 = arith.constant 29 : index
    %362 = memref.load %arg5[%c29_146] : memref<36xf32, #tpu.memory_space<smem>>
    %363 = vector.broadcast %362 : f32 to vector<16x36xf32>
    %364 = arith.mulf %363, %353 : vector<16x36xf32>
    %c29_147 = arith.constant 29 : index
    %365 = memref.load %arg7[%c29_147] : memref<36xf32, #tpu.memory_space<smem>>
    %366 = vector.broadcast %365 : f32 to vector<16x36xf32>
    %367 = arith.mulf %366, %353 : vector<16x36xf32>
    %368 = arith.addf %350, %364 : vector<16x36xf32>
    %369 = arith.addf %351, %367 : vector<16x36xf32>
    %c0_148 = arith.constant 0 : index
    %c2_149 = arith.constant 2 : index
    %c2_150 = arith.constant 2 : index
    %370 = vector.load %arg10[%c0_148, %c2_149, %c2_150] : memref<2x18x38xf32, #tpu.memory_space<vmem>>, vector<1x16x36xf32>
    %371 = vector.shape_cast %370 : vector<1x16x36xf32> to vector<16x36xf32>
    %c32_151 = arith.constant 32 : index
    %372 = memref.load %arg5[%c32_151] : memref<36xf32, #tpu.memory_space<smem>>
    %373 = vector.broadcast %372 : f32 to vector<16x36xf32>
    %374 = arith.mulf %373, %371 : vector<16x36xf32>
    %c32_152 = arith.constant 32 : index
    %375 = memref.load %arg7[%c32_152] : memref<36xf32, #tpu.memory_space<smem>>
    %376 = vector.broadcast %375 : f32 to vector<16x36xf32>
    %377 = arith.mulf %376, %371 : vector<16x36xf32>
    %378 = arith.addf %360, %374 : vector<16x36xf32>
    %379 = arith.addf %361, %377 : vector<16x36xf32>
    %c33_153 = arith.constant 33 : index
    %380 = memref.load %arg5[%c33_153] : memref<36xf32, #tpu.memory_space<smem>>
    %381 = vector.broadcast %380 : f32 to vector<16x36xf32>
    %382 = arith.mulf %381, %371 : vector<16x36xf32>
    %c33_154 = arith.constant 33 : index
    %383 = memref.load %arg7[%c33_154] : memref<36xf32, #tpu.memory_space<smem>>
    %384 = vector.broadcast %383 : f32 to vector<16x36xf32>
    %385 = arith.mulf %384, %371 : vector<16x36xf32>
    %386 = arith.addf %368, %382 : vector<16x36xf32>
    %387 = arith.addf %369, %385 : vector<16x36xf32>
    %c1_155 = arith.constant 1 : index
    %c0_156 = arith.constant 0 : index
    %c0_157 = arith.constant 0 : index
    %388 = vector.load %arg10[%c1_155, %c0_156, %c0_157] : memref<2x18x38xf32, #tpu.memory_space<vmem>>, vector<1x16x36xf32>
    %389 = vector.shape_cast %388 : vector<1x16x36xf32> to vector<16x36xf32>
    %c2_158 = arith.constant 2 : index
    %390 = memref.load %arg5[%c2_158] : memref<36xf32, #tpu.memory_space<smem>>
    %391 = vector.broadcast %390 : f32 to vector<16x36xf32>
    %392 = arith.mulf %391, %389 : vector<16x36xf32>
    %c2_159 = arith.constant 2 : index
    %393 = memref.load %arg7[%c2_159] : memref<36xf32, #tpu.memory_space<smem>>
    %394 = vector.broadcast %393 : f32 to vector<16x36xf32>
    %395 = arith.mulf %394, %389 : vector<16x36xf32>
    %396 = arith.addf %378, %392 : vector<16x36xf32>
    %397 = arith.addf %379, %395 : vector<16x36xf32>
    %c3_160 = arith.constant 3 : index
    %398 = memref.load %arg5[%c3_160] : memref<36xf32, #tpu.memory_space<smem>>
    %399 = vector.broadcast %398 : f32 to vector<16x36xf32>
    %400 = arith.mulf %399, %389 : vector<16x36xf32>
    %c3_161 = arith.constant 3 : index
    %401 = memref.load %arg7[%c3_161] : memref<36xf32, #tpu.memory_space<smem>>
    %402 = vector.broadcast %401 : f32 to vector<16x36xf32>
    %403 = arith.mulf %402, %389 : vector<16x36xf32>
    %404 = arith.addf %386, %400 : vector<16x36xf32>
    %405 = arith.addf %387, %403 : vector<16x36xf32>
    %c1_162 = arith.constant 1 : index
    %c0_163 = arith.constant 0 : index
    %c1_164 = arith.constant 1 : index
    %406 = vector.load %arg10[%c1_162, %c0_163, %c1_164] : memref<2x18x38xf32, #tpu.memory_space<vmem>>, vector<1x16x36xf32>
    %407 = vector.shape_cast %406 : vector<1x16x36xf32> to vector<16x36xf32>
    %c6_165 = arith.constant 6 : index
    %408 = memref.load %arg5[%c6_165] : memref<36xf32, #tpu.memory_space<smem>>
    %409 = vector.broadcast %408 : f32 to vector<16x36xf32>
    %410 = arith.mulf %409, %407 : vector<16x36xf32>
    %c6_166 = arith.constant 6 : index
    %411 = memref.load %arg7[%c6_166] : memref<36xf32, #tpu.memory_space<smem>>
    %412 = vector.broadcast %411 : f32 to vector<16x36xf32>
    %413 = arith.mulf %412, %407 : vector<16x36xf32>
    %414 = arith.addf %396, %410 : vector<16x36xf32>
    %415 = arith.addf %397, %413 : vector<16x36xf32>
    %c7_167 = arith.constant 7 : index
    %416 = memref.load %arg5[%c7_167] : memref<36xf32, #tpu.memory_space<smem>>
    %417 = vector.broadcast %416 : f32 to vector<16x36xf32>
    %418 = arith.mulf %417, %407 : vector<16x36xf32>
    %c7_168 = arith.constant 7 : index
    %419 = memref.load %arg7[%c7_168] : memref<36xf32, #tpu.memory_space<smem>>
    %420 = vector.broadcast %419 : f32 to vector<16x36xf32>
    %421 = arith.mulf %420, %407 : vector<16x36xf32>
    %422 = arith.addf %404, %418 : vector<16x36xf32>
    %423 = arith.addf %405, %421 : vector<16x36xf32>
    %c1_169 = arith.constant 1 : index
    %c0_170 = arith.constant 0 : index
    %c2_171 = arith.constant 2 : index
    %424 = vector.load %arg10[%c1_169, %c0_170, %c2_171] : memref<2x18x38xf32, #tpu.memory_space<vmem>>, vector<1x16x36xf32>
    %425 = vector.shape_cast %424 : vector<1x16x36xf32> to vector<16x36xf32>
    %c10_172 = arith.constant 10 : index
    %426 = memref.load %arg5[%c10_172] : memref<36xf32, #tpu.memory_space<smem>>
    %427 = vector.broadcast %426 : f32 to vector<16x36xf32>
    %428 = arith.mulf %427, %425 : vector<16x36xf32>
    %c10_173 = arith.constant 10 : index
    %429 = memref.load %arg7[%c10_173] : memref<36xf32, #tpu.memory_space<smem>>
    %430 = vector.broadcast %429 : f32 to vector<16x36xf32>
    %431 = arith.mulf %430, %425 : vector<16x36xf32>
    %432 = arith.addf %414, %428 : vector<16x36xf32>
    %433 = arith.addf %415, %431 : vector<16x36xf32>
    %c11_174 = arith.constant 11 : index
    %434 = memref.load %arg5[%c11_174] : memref<36xf32, #tpu.memory_space<smem>>
    %435 = vector.broadcast %434 : f32 to vector<16x36xf32>
    %436 = arith.mulf %435, %425 : vector<16x36xf32>
    %c11_175 = arith.constant 11 : index
    %437 = memref.load %arg7[%c11_175] : memref<36xf32, #tpu.memory_space<smem>>
    %438 = vector.broadcast %437 : f32 to vector<16x36xf32>
    %439 = arith.mulf %438, %425 : vector<16x36xf32>
    %440 = arith.addf %422, %436 : vector<16x36xf32>
    %441 = arith.addf %423, %439 : vector<16x36xf32>
    %c1_176 = arith.constant 1 : index
    %c1_177 = arith.constant 1 : index
    %c0_178 = arith.constant 0 : index
    %442 = vector.load %arg10[%c1_176, %c1_177, %c0_178] : memref<2x18x38xf32, #tpu.memory_space<vmem>>, vector<1x16x36xf32>
    %443 = vector.shape_cast %442 : vector<1x16x36xf32> to vector<16x36xf32>
    %c14_179 = arith.constant 14 : index
    %444 = memref.load %arg5[%c14_179] : memref<36xf32, #tpu.memory_space<smem>>
    %445 = vector.broadcast %444 : f32 to vector<16x36xf32>
    %446 = arith.mulf %445, %443 : vector<16x36xf32>
    %c14_180 = arith.constant 14 : index
    %447 = memref.load %arg7[%c14_180] : memref<36xf32, #tpu.memory_space<smem>>
    %448 = vector.broadcast %447 : f32 to vector<16x36xf32>
    %449 = arith.mulf %448, %443 : vector<16x36xf32>
    %450 = arith.addf %432, %446 : vector<16x36xf32>
    %451 = arith.addf %433, %449 : vector<16x36xf32>
    %c15_181 = arith.constant 15 : index
    %452 = memref.load %arg5[%c15_181] : memref<36xf32, #tpu.memory_space<smem>>
    %453 = vector.broadcast %452 : f32 to vector<16x36xf32>
    %454 = arith.mulf %453, %443 : vector<16x36xf32>
    %c15_182 = arith.constant 15 : index
    %455 = memref.load %arg7[%c15_182] : memref<36xf32, #tpu.memory_space<smem>>
    %456 = vector.broadcast %455 : f32 to vector<16x36xf32>
    %457 = arith.mulf %456, %443 : vector<16x36xf32>
    %458 = arith.addf %440, %454 : vector<16x36xf32>
    %459 = arith.addf %441, %457 : vector<16x36xf32>
    %c1_183 = arith.constant 1 : index
    %c1_184 = arith.constant 1 : index
    %c1_185 = arith.constant 1 : index
    %460 = vector.load %arg10[%c1_183, %c1_184, %c1_185] : memref<2x18x38xf32, #tpu.memory_space<vmem>>, vector<1x16x36xf32>
    %461 = vector.shape_cast %460 : vector<1x16x36xf32> to vector<16x36xf32>
    %c18_186 = arith.constant 18 : index
    %462 = memref.load %arg5[%c18_186] : memref<36xf32, #tpu.memory_space<smem>>
    %463 = vector.broadcast %462 : f32 to vector<16x36xf32>
    %464 = arith.mulf %463, %461 : vector<16x36xf32>
    %c18_187 = arith.constant 18 : index
    %465 = memref.load %arg7[%c18_187] : memref<36xf32, #tpu.memory_space<smem>>
    %466 = vector.broadcast %465 : f32 to vector<16x36xf32>
    %467 = arith.mulf %466, %461 : vector<16x36xf32>
    %468 = arith.addf %450, %464 : vector<16x36xf32>
    %469 = arith.addf %451, %467 : vector<16x36xf32>
    %c19_188 = arith.constant 19 : index
    %470 = memref.load %arg5[%c19_188] : memref<36xf32, #tpu.memory_space<smem>>
    %471 = vector.broadcast %470 : f32 to vector<16x36xf32>
    %472 = arith.mulf %471, %461 : vector<16x36xf32>
    %c19_189 = arith.constant 19 : index
    %473 = memref.load %arg7[%c19_189] : memref<36xf32, #tpu.memory_space<smem>>
    %474 = vector.broadcast %473 : f32 to vector<16x36xf32>
    %475 = arith.mulf %474, %461 : vector<16x36xf32>
    %476 = arith.addf %458, %472 : vector<16x36xf32>
    %477 = arith.addf %459, %475 : vector<16x36xf32>
    %c1_190 = arith.constant 1 : index
    %c1_191 = arith.constant 1 : index
    %c2_192 = arith.constant 2 : index
    %478 = vector.load %arg10[%c1_190, %c1_191, %c2_192] : memref<2x18x38xf32, #tpu.memory_space<vmem>>, vector<1x16x36xf32>
    %479 = vector.shape_cast %478 : vector<1x16x36xf32> to vector<16x36xf32>
    %c22_193 = arith.constant 22 : index
    %480 = memref.load %arg5[%c22_193] : memref<36xf32, #tpu.memory_space<smem>>
    %481 = vector.broadcast %480 : f32 to vector<16x36xf32>
    %482 = arith.mulf %481, %479 : vector<16x36xf32>
    %c22_194 = arith.constant 22 : index
    %483 = memref.load %arg7[%c22_194] : memref<36xf32, #tpu.memory_space<smem>>
    %484 = vector.broadcast %483 : f32 to vector<16x36xf32>
    %485 = arith.mulf %484, %479 : vector<16x36xf32>
    %486 = arith.addf %468, %482 : vector<16x36xf32>
    %487 = arith.addf %469, %485 : vector<16x36xf32>
    %c23_195 = arith.constant 23 : index
    %488 = memref.load %arg5[%c23_195] : memref<36xf32, #tpu.memory_space<smem>>
    %489 = vector.broadcast %488 : f32 to vector<16x36xf32>
    %490 = arith.mulf %489, %479 : vector<16x36xf32>
    %c23_196 = arith.constant 23 : index
    %491 = memref.load %arg7[%c23_196] : memref<36xf32, #tpu.memory_space<smem>>
    %492 = vector.broadcast %491 : f32 to vector<16x36xf32>
    %493 = arith.mulf %492, %479 : vector<16x36xf32>
    %494 = arith.addf %476, %490 : vector<16x36xf32>
    %495 = arith.addf %477, %493 : vector<16x36xf32>
    %c1_197 = arith.constant 1 : index
    %c2_198 = arith.constant 2 : index
    %c0_199 = arith.constant 0 : index
    %496 = vector.load %arg10[%c1_197, %c2_198, %c0_199] : memref<2x18x38xf32, #tpu.memory_space<vmem>>, vector<1x16x36xf32>
    %497 = vector.shape_cast %496 : vector<1x16x36xf32> to vector<16x36xf32>
    %c26_200 = arith.constant 26 : index
    %498 = memref.load %arg5[%c26_200] : memref<36xf32, #tpu.memory_space<smem>>
    %499 = vector.broadcast %498 : f32 to vector<16x36xf32>
    %500 = arith.mulf %499, %497 : vector<16x36xf32>
    %c26_201 = arith.constant 26 : index
    %501 = memref.load %arg7[%c26_201] : memref<36xf32, #tpu.memory_space<smem>>
    %502 = vector.broadcast %501 : f32 to vector<16x36xf32>
    %503 = arith.mulf %502, %497 : vector<16x36xf32>
    %504 = arith.addf %486, %500 : vector<16x36xf32>
    %505 = arith.addf %487, %503 : vector<16x36xf32>
    %c27_202 = arith.constant 27 : index
    %506 = memref.load %arg5[%c27_202] : memref<36xf32, #tpu.memory_space<smem>>
    %507 = vector.broadcast %506 : f32 to vector<16x36xf32>
    %508 = arith.mulf %507, %497 : vector<16x36xf32>
    %c27_203 = arith.constant 27 : index
    %509 = memref.load %arg7[%c27_203] : memref<36xf32, #tpu.memory_space<smem>>
    %510 = vector.broadcast %509 : f32 to vector<16x36xf32>
    %511 = arith.mulf %510, %497 : vector<16x36xf32>
    %512 = arith.addf %494, %508 : vector<16x36xf32>
    %513 = arith.addf %495, %511 : vector<16x36xf32>
    %c1_204 = arith.constant 1 : index
    %c2_205 = arith.constant 2 : index
    %c1_206 = arith.constant 1 : index
    %514 = vector.load %arg10[%c1_204, %c2_205, %c1_206] : memref<2x18x38xf32, #tpu.memory_space<vmem>>, vector<1x16x36xf32>
    %515 = vector.shape_cast %514 : vector<1x16x36xf32> to vector<16x36xf32>
    %c30_207 = arith.constant 30 : index
    %516 = memref.load %arg5[%c30_207] : memref<36xf32, #tpu.memory_space<smem>>
    %517 = vector.broadcast %516 : f32 to vector<16x36xf32>
    %518 = arith.mulf %517, %515 : vector<16x36xf32>
    %c30_208 = arith.constant 30 : index
    %519 = memref.load %arg7[%c30_208] : memref<36xf32, #tpu.memory_space<smem>>
    %520 = vector.broadcast %519 : f32 to vector<16x36xf32>
    %521 = arith.mulf %520, %515 : vector<16x36xf32>
    %522 = arith.addf %504, %518 : vector<16x36xf32>
    %523 = arith.addf %505, %521 : vector<16x36xf32>
    %c31_209 = arith.constant 31 : index
    %524 = memref.load %arg5[%c31_209] : memref<36xf32, #tpu.memory_space<smem>>
    %525 = vector.broadcast %524 : f32 to vector<16x36xf32>
    %526 = arith.mulf %525, %515 : vector<16x36xf32>
    %c31_210 = arith.constant 31 : index
    %527 = memref.load %arg7[%c31_210] : memref<36xf32, #tpu.memory_space<smem>>
    %528 = vector.broadcast %527 : f32 to vector<16x36xf32>
    %529 = arith.mulf %528, %515 : vector<16x36xf32>
    %530 = arith.addf %512, %526 : vector<16x36xf32>
    %531 = arith.addf %513, %529 : vector<16x36xf32>
    %c1_211 = arith.constant 1 : index
    %c2_212 = arith.constant 2 : index
    %c2_213 = arith.constant 2 : index
    %532 = vector.load %arg10[%c1_211, %c2_212, %c2_213] : memref<2x18x38xf32, #tpu.memory_space<vmem>>, vector<1x16x36xf32>
    %533 = vector.shape_cast %532 : vector<1x16x36xf32> to vector<16x36xf32>
    %c34_214 = arith.constant 34 : index
    %534 = memref.load %arg5[%c34_214] : memref<36xf32, #tpu.memory_space<smem>>
    %535 = vector.broadcast %534 : f32 to vector<16x36xf32>
    %536 = arith.mulf %535, %533 : vector<16x36xf32>
    %c34_215 = arith.constant 34 : index
    %537 = memref.load %arg7[%c34_215] : memref<36xf32, #tpu.memory_space<smem>>
    %538 = vector.broadcast %537 : f32 to vector<16x36xf32>
    %539 = arith.mulf %538, %533 : vector<16x36xf32>
    %540 = arith.addf %522, %536 : vector<16x36xf32>
    %541 = arith.addf %523, %539 : vector<16x36xf32>
    %c35_216 = arith.constant 35 : index
    %542 = memref.load %arg5[%c35_216] : memref<36xf32, #tpu.memory_space<smem>>
    %543 = vector.broadcast %542 : f32 to vector<16x36xf32>
    %544 = arith.mulf %543, %533 : vector<16x36xf32>
    %c35_217 = arith.constant 35 : index
    %545 = memref.load %arg7[%c35_217] : memref<36xf32, #tpu.memory_space<smem>>
    %546 = vector.broadcast %545 : f32 to vector<16x36xf32>
    %547 = arith.mulf %546, %533 : vector<16x36xf32>
    %548 = arith.addf %530, %544 : vector<16x36xf32>
    %549 = arith.addf %531, %547 : vector<16x36xf32>
    %cst_218 = arith.constant 5.000000e-01 : f32
    %550 = vector.broadcast %cst_218 : f32 to vector<16x36xf32>
    %551 = arith.mulf %550, %541 : vector<16x36xf32>
    %552 = math.tanh %551 : vector<16x36xf32>
    %cst_219 = arith.constant 1.000000e+00 : f32
    %553 = vector.broadcast %cst_219 : f32 to vector<16x36xf32>
    %554 = arith.mulf %553, %552 : vector<16x36xf32>
    %c2_220 = arith.constant 2 : index
    %c1_221 = arith.constant 1 : index
    %c1_222 = arith.constant 1 : index
    %555 = vector.load %arg1[%c2_220, %c1_221, %c1_222] : memref<4x18x38xf32, #tpu.memory_space<vmem>>, vector<1x16x36xf32>
    %556 = vector.shape_cast %555 : vector<1x16x36xf32> to vector<16x36xf32>
    %557 = math.exp %554 : vector<16x36xf32>
    %558 = arith.mulf %556, %557 : vector<16x36xf32>
    %559 = arith.addf %558, %540 : vector<16x36xf32>
    %c2_223 = arith.constant 2 : index
    %c0_224 = arith.constant 0 : index
    %c0_225 = arith.constant 0 : index
    %560 = vector.load %arg9[%c2_223, %c0_224, %c0_225] : memref<4x16x36xf32, #tpu.memory_space<vmem>>, vector<1x16x36xf32>
    %561 = vector.shape_cast %560 : vector<1x16x36xf32> to vector<16x36xf32>
    %562 = vector.shape_cast %559 : vector<16x36xf32> to vector<1x16x36xf32>
    tpu.vector_store %arg9[%c2_223, %c0_224, %c0_225], %562 {strides = array<i32>} : memref<4x16x36xf32, #tpu.memory_space<vmem>>, vector<1x16x36xf32>,
    %cst_226 = arith.constant 5.000000e-01 : f32
    %563 = vector.broadcast %cst_226 : f32 to vector<16x36xf32>
    %564 = arith.mulf %563, %549 : vector<16x36xf32>
    %565 = math.tanh %564 : vector<16x36xf32>
    %cst_227 = arith.constant 1.000000e+00 : f32
    %566 = vector.broadcast %cst_227 : f32 to vector<16x36xf32>
    %567 = arith.mulf %566, %565 : vector<16x36xf32>
    %c3_228 = arith.constant 3 : index
    %c1_229 = arith.constant 1 : index
    %c1_230 = arith.constant 1 : index
    %568 = vector.load %arg1[%c3_228, %c1_229, %c1_230] : memref<4x18x38xf32, #tpu.memory_space<vmem>>, vector<1x16x36xf32>
    %569 = vector.shape_cast %568 : vector<1x16x36xf32> to vector<16x36xf32>
    %570 = math.exp %567 : vector<16x36xf32>
    %571 = arith.mulf %569, %570 : vector<16x36xf32>
    %572 = arith.addf %571, %548 : vector<16x36xf32>
    %c3_231 = arith.constant 3 : index
    %c0_232 = arith.constant 0 : index
    %c0_233 = arith.constant 0 : index
    %573 = vector.load %arg9[%c3_231, %c0_232, %c0_233] : memref<4x16x36xf32, #tpu.memory_space<vmem>>, vector<1x16x36xf32>
    %574 = vector.shape_cast %573 : vector<1x16x36xf32> to vector<16x36xf32>
    %575 = vector.shape_cast %572 : vector<16x36xf32> to vector<1x16x36xf32>
    tpu.vector_store %arg9[%c3_231, %c0_232, %c0_233], %575 {strides = array<i32>} : memref<4x16x36xf32, #tpu.memory_space<vmem>>, vector<1x16x36xf32>,
    return
  }
  func.func @transform_0(%arg0: i32) -> (i32, i32, i32) {
    %c0_i32 = arith.constant 0 : i32
    %c0_i32_0 = arith.constant 0 : i32
    %c0_i32_1 = arith.constant 0 : i32
    return %arg0, %c0_i32, %c0_i32_0 : i32, i32, i32
  }
  func.func @transform_1(%arg0: i32) -> (i32, i32) {
    %c0_i32 = arith.constant 0 : i32
    %c0_i32_0 = arith.constant 0 : i32
    %c0_i32_1 = arith.constant 0 : i32
    return %c0_i32, %c0_i32_0 : i32, i32
  }
  func.func @transform_2(%arg0: i32) -> i32 {
    %c0_i32 = arith.constant 0 : i32
    %c0_i32_0 = arith.constant 0 : i32
    return %c0_i32 : i32
  }
  func.func @transform_3(%arg0: i32) -> i32 {
    %c0_i32 = arith.constant 0 : i32
    %c0_i32_0 = arith.constant 0 : i32
    return %c0_i32 : i32
  }
  func.func @transform_4(%arg0: i32) -> i32 {
    %c0_i32 = arith.constant 0 : i32
    %c0_i32_0 = arith.constant 0 : i32
    return %c0_i32 : i32
  }
  func.func @transform_5(%arg0: i32) -> i32 {
    %c0_i32 = arith.constant 0 : i32
    %c0_i32_0 = arith.constant 0 : i32
    return %c0_i32 : i32
  }
  func.func @transform_6(%arg0: i32) -> i32 {
    %c0_i32 = arith.constant 0 : i32
    %c0_i32_0 = arith.constant 0 : i32
    return %c0_i32 : i32
  }
  func.func @transform_7(%arg0: i32) -> i32 {
    %c0_i32 = arith.constant 0 : i32
    %c0_i32_0 = arith.constant 0 : i32
    return %c0_i32 : i32
  }
  func.func @transform_8(%arg0: i32) -> (i32, i32, i32) {
    %c0_i32 = arith.constant 0 : i32
    %c0_i32_0 = arith.constant 0 : i32
    %c0_i32_1 = arith.constant 0 : i32
    return %arg0, %c0_i32, %c0_i32_0 : i32, i32, i32
  }
}

</mosaic_0001>

<bundles_post_ra>
// kernel: invblock_exp_forward.1
= control target key start
LH: loop header
LB: loop body
LE: loop exit
PB: predicated region body
PF: predicated region fallthrough
CT: control target
= control target key end

     0   :  { %13 = vsyncpa [#allocation4], 0  ;;  %s2757_s0 = inlined_call_operand.vmem [shape: f32[4,18,38], index: 0, kind: input, shape index: {}]   ;;  %s2758_s1 = inlined_call_operand.vmem [shape: f32[16,36], index: 1, kind: input, shape index: {}]   ;;  %s2759_s2 = inlined_call_operand.vmem [shape: f32[36], index: 2, kind: input, shape index: {}]   ;;  %s2760_s3 = inlined_call_operand.vmem [shape: f32[2], index: 3, kind: input, shape index: {}]   ;;  %s2761_s4 = inlined_call_operand.vmem [shape: f32[36], index: 4, kind: input, shape index: {}]   ;;  %s2762_s5 = inlined_call_operand.vmem [shape: f32[2], index: 5, kind: input, shape index: {}]   ;;  %s2763_s6 = inlined_call_operand.vmem [shape: f32[36], index: 6, kind: input, shape index: {}]   ;;  %s2764_s7 = inlined_call_operand.vmem [shape: f32[2], index: 7, kind: input, shape index: {}]   ;;  %s2765_s8 = inlined_call_operand.vmem [shape: f32[4,16,36], index: 8, kind: output, shape index: {}]  }
   0x1   :  { %14 = vsyncpa [#allocation6], 0 }
   0x2   :  { %15 = vsyncpa [#allocation9], 0  ;;  %s35_s29 = sshll.u32 %s2760_s3, 4  ;;  %s36_s29 = int_to_ptr.vmem [resolvable:$true] %s35_s29 }
   0x3   :  { %16 = vsyncpa [#allocation12], 0  ;;  %s53_s10 = sshll.u32 %s2762_s5, 4  ;;  %s1762_s11 = smov [#allocation5]   ;;  %s54_s10 = int_to_ptr.vmem [resolvable:$true] %s53_s10 }
   0x4   :  { %38 = dma.vmem_to_smem %s36_s29, 16, %s1762_s11, [#allocation6]  }
   0x5   :  { %s1763_s12 = smov [#allocation8]   ;;  %s26_s15 = sshll.u32 %s2759_s2, 4  ;;  %s27_s15 = int_to_ptr.vmem [resolvable:$true] %s26_s15 }
   0x6   :  { %56 = dma.vmem_to_smem %s54_s10, 16, %s1763_s12, [#allocation9]  }
   0x7   :  { %s44_s3 = sshll.u32 %s2761_s4, 4  ;;  %s1764_s18 = smov [#allocation3]   ;;  %s45_s3 = int_to_ptr.vmem [resolvable:$true] %s44_s3 }
   0x8   :  { %29 = dma.vmem_to_smem %s27_s15, 16, %s1764_s18, [#allocation4]  }
   0x9   :  { %s1765_s19 = smov [#allocation7]   ;;  %s62_s21 = sshll.u32 %s2763_s6, 4  ;;  %s63_s21 = int_to_ptr.vmem [resolvable:$true] %s62_s21 }
   0xa   :  { %47 = dma.vmem_to_smem %s45_s3, 16, %s1765_s19, [#allocation6]  }
   0xb   :  { %s71_s24 = sshll.u32 %s2764_s7, 4  ;;  %s1766_s2 = smov [#allocation10]   ;;  %s72_s24 = int_to_ptr.vmem [resolvable:$true] %s71_s24 }
   0xc   :  { %65 = dma.vmem_to_smem %s63_s21, 16, %s1766_s2, [#allocation9]  }
   0xd   :  { %s1767_s25 = smov [#allocation11]  }
   0xe   :  { %74 = dma.vmem_to_smem %s72_s24, 16, %s1767_s25, [#allocation12]  }
   0xf   :  { %1754 = dma.done.wait [#allocation4], 16  }
  0x10   :  { %1755 = vsyncadd [#allocation4], 4294967280 }
  0x11   :  { %1756 = dma.done.wait [#allocation6], 32  }
  0x12   :  { %1757 = vsyncadd [#allocation6], 4294967264 }
  0x13   :  { %1758 = dma.done.wait [#allocation9], 32  }
  0x14   :  { %1759 = vsyncadd [#allocation9], 4294967264 }
  0x15   :  { %1760 = dma.done.wait [#allocation12], 16  }
  0x16   :  { %1761 = vsyncadd [#allocation12], 4294967280 }
  0x17   :  { %99 = sfence }
  0x18   :  { %s1529_s4 = sld [smem:[#allocation3 + $0x5]]  ;;  %v1838_v0 = vld [vmem:[%s2757_s0 + $0x30] sm:$0xff]  ;;  %s1768_s7 = smov 127   ;;  %v1847_v7 = vld [vmem:[%s2757_s0 + $0x38] sm:$0xff]  ;;  %v1920_v44 = vld [vmem:[%s2757_s0 + $0x48] sm:$0xff]  ;;  %vm528_vm0 = vcmask 303104  }
  0x19   :  { %s1528_s6 = sld [smem:[#allocation3 + $0x4]]  ;;  %s1769_s10 = smov 126   ;;  %v1862_v14 = vld [vmem:[%s2757_s0 + $0x31] sm:$0xff]  ;;  %v1870_v18 = vld [vmem:[%s2757_s0 + $0x39] sm:$0xff]  ;;  %v1940_v56 = vld [vmem:[%s2757_s0 + $0x49] sm:$0xff]  ;;  %vm567_vm1 = vcmask 302088  }
  0x1a   :  { %s1530_s26 = sld [smem:[#allocation3 + $0x8]]  ;;  %v1887_v27 = vld [vmem:[%s2757_s0 + $0x32] sm:$0xff]  ;;  %v1895_v31 = vld [vmem:[%s2757_s0 + $0x3a] sm:$0xff]  ;;  %vm554_vm2 = vcmask 293888  }
  0x1b   :  { %s1531_s9 = sld [smem:[#allocation3 + $0x9]]  ;;  %v1915_v42 = vld [vmem:[%s2757_s0 + $0x50] sm:$0xff] }
  0x1c   :  { %s1536_s11 = sld [smem:[#allocation3 + $0x10]]  ;;  %v1948_v60 = vld [vmem:[%s2757_s0 + $0x51] sm:$0xff] }
  0x1d   :  { %s1537_s12 = sld [smem:[#allocation3 + $0x11]] }
  0x1e   :  { %v136_v1 = vstv %s1529_s4  ;;  %s1538_s15 = sld [smem:[#allocation3 + $0x14]] }
  0x1f   :  { %v137_v2 = vmul.f32 %v1838_v0, %v136_v1  ;;  %v122_v3 = vstv %s1528_s6  ;;  %v138_v8 = vmul.f32 %v1847_v7, %v136_v1  ;;  %s1539_s3 = sld [smem:[#allocation3 + $0x15]] }
  0x20   :  { %v123_v4 = vmul.f32 %v1838_v0, %v122_v3  ;;  %v150_v5 = vstv %s1530_s26  ;;  %v124_v9 = vmul.f32 %v1847_v7, %v122_v3  ;;  %s1544_s18 = sld [smem:[#allocation3 + $0x1c]] }
  0x21   :  { %141 = vrot.lane.b32.xlu1 %v137_v2, %s1768_s7  ;;  %v151_v6 = vmul.f32 %v1838_v0, %v150_v5  ;;  %v152_v10 = vmul.f32 %v1847_v7, %v150_v5  ;;  %v164_v11 = vstv %s1531_s9  ;;  %s1545_s20 = sld [smem:[#allocation3 + $0x1d]] }
  0x22   :  { %127 = vrot.lane.b32.xlu0 %v123_v4, %s1768_s7  ;;  %v166_v12 = vmul.f32 %v1847_v7, %v164_v11  ;;  %v165_v13 = vmul.f32 %v1838_v0, %v164_v11  ;;  %v192_v15 = vstv %s1536_s11  ;;  %s1546_s23 = sld [smem:[#allocation3 + $0x20]] }
  0x23   :  { %155 = vrot.lane.b32.xlu2 %v151_v6, %s1769_s10  ;;  %v193_v16 = vmul.f32 %v1862_v14, %v192_v15  ;;  %v206_v17 = vstv %s1537_s12  ;;  %v194_v20 = vmul.f32 %v1870_v18, %v192_v15  ;;  %s1547_s24 = sld [smem:[#allocation3 + $0x21]] }
  0x24   :  { %v207_v19 = vmul.f32 %v1862_v14, %v206_v17  ;;  %v208_v21 = vmul.f32 %v1870_v18, %v206_v17  ;;  %v220_v22 = vstv %s1538_s15  ;;  %s1552_s2 = sld [smem:[#allocation3 + $0x6]] }
  0x25   :  { %v222_v23 = vmul.f32 %v1870_v18, %v220_v22  ;;  %v221_v24 = vmul.f32 %v1862_v14, %v220_v22  ;;  %v234_v25 = vstv %s1539_s3  ;;  %s1553_s25 = sld [smem:[#allocation3 + $0x7]] }
  0x26   :  { %v235_v26 = vmul.f32 %v1862_v14, %v234_v25  ;;  %v262_v28 = vstv %s1544_s18  ;;  %v236_v30 = vmul.f32 %v1870_v18, %v234_v25  ;;  %s1554_s26 = sld [smem:[#allocation3 + $0xa]] }
  0x27   :  { %v263_v29 = vmul.f32 %v1887_v27, %v262_v28  ;;  %v264_v32 = vmul.f32 %v1895_v31, %v262_v28  ;;  %v276_v33 = vstv %s1545_s20  ;;  %s1555_s29 = sld [smem:[#allocation3 + $0xb]] }
  0x28   :  { %v278_v34 = vmul.f32 %v1895_v31, %v276_v33  ;;  %v277_v35 = vmul.f32 %v1887_v27, %v276_v33  ;;  %v290_v36 = vstv %s1546_s23  ;;  %s1560_s30 = sld [smem:[#allocation3 + $0x12]] }
  0x29   :  { %143 = vrot.lane.b32.xlu1 %v138_v8, %s1768_s7  ;;  %v291_v37 = vmul.f32 %v1887_v27, %v290_v36  ;;  %v304_v38 = vstv %s1547_s24  ;;  %v292_v40 = vmul.f32 %v1895_v31, %v290_v36  ;;  %s1561_s9 = sld [smem:[#allocation3 + $0x13]]  ;;  %v1967_v8 = vld [vmem:[%s2757_s0 + $0x4a] sm:$0xff] }
  0x2a   :  { %129 = vrot.lane.b32.xlu0 %v124_v9, %s1768_s7  ;;  %v305_v39 = vmul.f32 %v1887_v27, %v304_v38  ;;  %v306_v41 = vmul.f32 %v1895_v31, %v304_v38  ;;  %v333_v43 = vstv %s1552_s2  ;;  %s1562_s13 = sld [smem:[#allocation3 + $0x16]] }
  0x2b   :  { %157 = vrot.lane.b32.xlu2 %v152_v10, %s1769_s10  ;;  %v335_v45 = vmul.f32 %v1915_v42, %v333_v43  ;;  %v334_v46 = vmul.f32 %v1920_v44, %v333_v43  ;;  %v347_v47 = vstv %s1553_s25  ;;  %s1563_s16 = sld [smem:[#allocation3 + $0x17]] }
  0x2c   :  { %v348_v48 = vmul.f32 %v1920_v44, %v347_v47  ;;  %v361_v49 = vstv %s1554_s26  ;;  %v349_v51 = vmul.f32 %v1915_v42, %v347_v47  ;;  %s1568_s17 = sld [smem:[#allocation3 + $0x1e]] }
  0x2d   :  { %v362_v50 = vmul.f32 %v1920_v44, %v361_v49  ;;  %v363_v52 = vmul.f32 %v1915_v42, %v361_v49  ;;  %v375_v53 = vstv %s1555_s29  ;;  %s1569_s19 = sld [smem:[#allocation3 + $0x1f]] }
  0x2e   :  { %v377_v54 = vmul.f32 %v1915_v42, %v375_v53  ;;  %v376_v55 = vmul.f32 %v1920_v44, %v375_v53  ;;  %v403_v57 = vstv %s1560_s30  ;;  %s1570_s21 = sld [smem:[#allocation3 + $0x22]] }
  0x2f   :  { %v404_v58 = vmul.f32 %v1940_v56, %v403_v57  ;;  %v417_v59 = vstv %s1561_s9  ;;  %v405_v62 = vmul.f32 %v1948_v60, %v403_v57  ;;  %s1571_s22 = sld [smem:[#allocation3 + $0x23]]  ;;  %s1770_s9 = smov 1  }
  0x30   :  { %v418_v61 = vmul.f32 %v1940_v56, %v417_v59  ;;  %v419_v63 = vmul.f32 %v1948_v60, %v417_v59  ;;  %v431_v1 = vstv %s1562_s13  ;;  %s105_s23 = sld [smem:[#allocation3]] }
  0x31   :  { %171 = vrot.lane.b32.xlu1 %v166_v12, %s1769_s10  ;;  %v433_v2 = vmul.f32 %v1948_v60, %v431_v1  ;;  %v432_v4 = vmul.f32 %v1940_v56, %v431_v1  ;;  %v445_v5 = vstv %s1563_s16  ;;  %s109_s24 = sld [smem:[#allocation5]] }
  0x32   :  { %169 = vrot.lane.b32.xlu0 %v165_v13, %s1769_s10  ;;  %v446_v6 = vmul.f32 %v1940_v56, %v445_v5  ;;  %v473_v9 = vstv %s1568_s17  ;;  %v447_v12 = vmul.f32 %v1948_v60, %v445_v5  ;;  %v1977_v13 = vld [vmem:[%s2757_s0 + $0x52] sm:$0xff]  ;;  %s2028_s2 = sld [smem:[#allocation3 + $0xc]] }
  0x33   :  { %197 = vrot.lane.b32.xlu2 %v193_v16, %s1768_s7  ;;  %v474_v10 = vmul.f32 %v1967_v8, %v473_v9  ;;  %v475_v15 = vmul.f32 %v1977_v13, %v473_v9  ;;  %v487_v16 = vstv %s1569_s19  ;;  %s1526_s25 = sld [smem:[#allocation3 + $0x1]] }
  0x34   :  { %v489_v17 = vmul.f32 %v1977_v13, %v487_v16  ;;  %s1527_s4 = sld [smem:[#allocation5 + $0x1]] }
  0x35   :  { %s2037_s6 = sld [smem:[#allocation3 + $0x18]] }
  0x36   :  { %v106_v49 = vstv %s105_s23  ;;  %s2042_s26 = sld [smem:[#allocation3 + $0xd]] }
  0x37   :  { %v110_v53 = vstv %s109_s24  ;;  %s2052_s27 = sld [smem:[#allocation3 + $0x2]] }
  0x38   :  { %s2059_s28 = sld [smem:[#allocation3 + $0x19]] }
  0x39   :  { %211 = vrot.lane.b32.xlu1 %v207_v19, %s1768_s7  ;;  %v114_v1 = vstv %s1526_s25  ;;  %s2072_s11 = sld [smem:[#allocation3 + $0xe]] }
  0x3a   :  { %199 = vrot.lane.b32.xlu0 %v194_v20, %s1768_s7  ;;  %v488_v20 = vmul.f32 %v1967_v8, %v487_v16  ;;  %s2085_s12 = sld [smem:[#allocation3 + $0x3]] }
  0x3b   :  { %213 = vrot.lane.b32.xlu2 %v208_v21, %s1768_s7  ;;  %v501_v21 = vstv %s1570_s21  ;;  %v250_v16 = vstv %s2037_s6  ;;  %s2092_s13 = sld [smem:[#allocation3 + $0x1a]] }
  0x3c   :  { %v502_v22 = vmul.f32 %v1967_v8, %v501_v21  ;;  %s2101_s14 = sld [smem:[#allocation3 + $0xf]] }
  0x3d   :  { %s2120_s17 = sld [smem:[#allocation3 + $0x1b]] }
  0x3e   :  { %s2141_s18 = sld [smem:[#allocation7 + $0x4]] }
  0x3f   :  { %s1582_s25 = sld [smem:[#allocation7 + $0x5]] }
  0x40   :  { %s1586_s6 = sld [smem:[#allocation7 + $0x9]] }
  0x41   :  { %227 = vrot.lane.b32.xlu1 %v222_v23, %s1769_s10  ;;  %v515_v23 = vstv %s1571_s22  ;;  %s1581_s22 = sld [smem:[#allocation10 + $0x4]] }
  0x42   :  { %225 = vrot.lane.b32.xlu0 %v221_v24, %s1769_s10  ;;  %s1592_s29 = sld [smem:[#allocation7 + $0x10]] }
  0x43   :  { %239 = vrot.lane.b32.xlu2 %v235_v26, %s1769_s10  ;;  %v516_v26 = vmul.f32 %v1967_v8, %v515_v23  ;;  %s1594_s30 = sld [smem:[#allocation7 + $0x11]] }
  0x44   :  { %s1598_s15 = sld [smem:[#allocation7 + $0x15]] }
  0x45   :  { %s2234_s3 = sld [smem:[#allocation7 + $0x1d]] }
  0x46   :  { %s2239_s19 = sld [smem:[#allocation7]] }
  0x47   :  { %s2251_s21 = sld [smem:[#allocation8]] }
  0x48   :  { %s1607_s23 = sld [smem:[#allocation10 + $0x1d]] }
  0x49   :  { %267 = vrot.lane.b32.xlu1 %v263_v29, %s1768_s7  ;;  %v503_v29 = vmul.f32 %v1977_v13, %v501_v21  ;;  %s2262_s24 = sld [smem:[#allocation8 + $0x1]] }
  0x4a   :  { %241 = vrot.lane.b32.xlu0 %v236_v30, %s1769_s10  ;;  %v517_v30 = vmul.f32 %v1977_v13, %v515_v23  ;;  %s2342_s16 = sld [smem:[#allocation10 + $0x6]] }
  0x4b   :  { %269 = vrot.lane.b32.xlu2 %v264_v32, %s1768_s7  ;;  %s2397_s5 = sld [smem:[#allocation7 + $0xa]] }
  0x4c   :  { %s2402_s20 = sld [smem:[#allocation10 + $0xd]] }
  0x51   :  { %283 = vrot.lane.b32.xlu1 %v278_v34, %s1768_s7 }
  0x52   :  { %281 = vrot.lane.b32.xlu0 %v277_v35, %s1768_s7 }
  0x53   :  { %295 = vrot.lane.b32.xlu2 %v291_v37, %s1769_s10 }
  0x59   :  { %309 = vrot.lane.b32.xlu1 %v305_v39, %s1769_s10 }
  0x5a   :  { %297 = vrot.lane.b32.xlu0 %v292_v40, %s1769_s10 }
  0x5b   :  { %311 = vrot.lane.b32.xlu2 %v306_v41, %s1769_s10 }
  0x61   :  { %340 = vrot.lane.b32.xlu1 %v335_v45, %s1768_s7 }
  0x62   :  { %338 = vrot.lane.b32.xlu0 %v334_v46, %s1768_s7 }
  0x63   :  { %352 = vrot.lane.b32.xlu2 %v348_v48, %s1768_s7 }
  0x69   :  { %366 = vrot.lane.b32.xlu1 %v362_v50, %s1769_s10 }
  0x6a   :  { %354 = vrot.lane.b32.xlu0 %v349_v51, %s1768_s7  ;;  %v107_v51 = vmul.f32 %v1838_v0, %v106_v49 }
  0x6b   :  { %368 = vrot.lane.b32.xlu2 %v363_v52, %s1769_s10 }
  0x71   :  { %382 = vrot.lane.b32.xlu1 %v377_v54, %s1769_s10  ;;  %v111_v54 = vadd.f32 %v110_v53, %v107_v51 }
  0x72   :  { %380 = vrot.lane.b32.xlu0 %v376_v55, %s1769_s10 }
  0x73   :  { %408 = vrot.lane.b32.xlu2 %v404_v58, %s1768_s7 }
  0x79   :  { %422 = vrot.lane.b32.xlu1 %v418_v61, %s1768_s7  ;;  %v180_v61 = vstv %s2028_s2  ;;  %s1583_s2 = sld [smem:[#allocation10 + $0x5]] }
  0x7a   :  { %410 = vrot.lane.b32.xlu0 %v405_v62, %s1768_s7 }
  0x7b   :  { %424 = vrot.lane.b32.xlu2 %v419_v63, %s1768_s7  ;;  %v181_v63 = vmul.f32 %v1862_v14, %v180_v61 }
  0x7d   :  { %v1958_v3 = vpop.permute.xlu2 %155 }
  0x81   :  { %438 = vrot.lane.b32.xlu1 %v433_v2, %s1769_s10  ;;  %v108_v2 = vmul.f32 %v1847_v7, %v106_v49 }
  0x82   :  { %436 = vrot.lane.b32.xlu0 %v432_v4, %s1769_s10 }
  0x83   :  { %450 = vrot.lane.b32.xlu2 %v446_v6, %s1769_s10  ;;  %v115_v6 = vmul.f32 %v1838_v0, %v114_v1 }
  0x85   :  { %v1971_v11 = vpop.permute.xlu2 %157 }
  0x89   :  { %478 = vrot.lane.b32.xlu1 %v474_v10, %s1768_s7 }
  0x8a   :  { %452 = vrot.lane.b32.xlu0 %v447_v12, %s1769_s10  ;;  %v118_v12 = vstv %s1527_s4  ;;  %s1584_s4 = sld [smem:[#allocation7 + $0x8]] }
  0x8b   :  { %480 = vrot.lane.b32.xlu2 %v475_v15, %s1768_s7  ;;  %v112_v15 = vadd.f32 %v110_v53, %v108_v2 }
  0x8d   :  { %v1984_v19 = vpop.permute.xlu2 %197 }
  0x91   :  { %494 = vrot.lane.b32.xlu1 %v489_v17, %s1768_s7 }
  0x92   :  { %492 = vrot.lane.b32.xlu0 %v488_v20, %s1768_s7  ;;  %v116_v20 = vmul.f32 %v1847_v7, %v114_v1 }
  0x93   :  { %v1990_v24 = vpop.permute.xlu1 %141  ;;  %506 = vrot.lane.b32.xlu2 %v502_v22, %s1769_s10  ;;  %v251_v22 = vmul.f32 %v1887_v27, %v250_v16 }
  0x94   :  { %v128_v25 = vpop.permute.xlu0 %127 }
  0x95   :  { %v1994_v28 = vpop.permute.xlu2 %213  ;;  %v133_v58 = vadd.f32 %v128_v25, %v111_v54  ;;  %v186_v25 = vstv %s2042_s26  ;;  %s1585_s26 = sld [smem:[#allocation10 + $0x8]] }
  0x96   :  { %v187_v7 = vmul.f32 %v1862_v14, %v186_v25  ;;  %v188_v1 = vmul.f32 %v1870_v18, %v186_v25 }
  0x97   :  { %v161_v62 = vadd.f32 %v1958_v3, %v133_v58  ;;  %v119_v3 = vadd.f32 %v118_v12, %v115_v6  ;;  %v321_v58 = vstv %s2052_s27  ;;  %v256_v6 = vstv %s2059_s28  ;;  %s1587_s27 = sld [smem:[#allocation10 + $0x9]] }
  0x98   :  { %s1593_s28 = sld [smem:[#allocation10 + $0x10]] }
  0x99   :  { %520 = vrot.lane.b32.xlu1 %v516_v26, %s1769_s10  ;;  %v183_v9 = vadd.f32 %v181_v63, %v161_v62  ;;  %v147_v0 = vadd.f32 %v1990_v24, %v119_v3  ;;  %v100_v24 = vld [vmem:[%s2758_s1] sm:$0xff] }
  0x9a   :  { %508 = vrot.lane.b32.xlu0 %v503_v29, %s1769_s10 }
  0x9b   :  { %v2000_v32 = vpop.permute.xlu1 %143  ;;  %522 = vrot.lane.b32.xlu2 %v517_v30, %s1769_s10  ;;  %v203_v17 = vadd.f32 %v1984_v19, %v183_v9  ;;  %v120_v30 = vadd.f32 %v118_v12, %v116_v20  ;;  %v252_v12 = vmul.f32 %v1895_v31, %v250_v16  ;;  %v391_v20 = vstv %s2072_s11  ;;  %s1596_s11 = sld [smem:[#allocation7 + $0x14]] }
  0x9c   :  { %v130_v33 = vpop.permute.xlu0 %129  ;;  %v392_v16 = vmul.f32 %v1940_v56, %v391_v20 }
  0x9d   :  { %v2003_v34 = vpop.permute.xlu2 %239  ;;  %v134_v23 = vadd.f32 %v130_v33, %v112_v15  ;;  %v182_v33 = vmul.f32 %v1870_v18, %v180_v61  ;;  %v148_v54 = vadd.f32 %v2000_v32, %v120_v30  ;;  %v322_v61 = vmul.f32 %v1920_v44, %v321_v58 }
  0x9e   :  { %v257_v15 = vmul.f32 %v1887_v27, %v256_v6 }
  0xa1   :  { %559 = vrot.lane.b32.xlu1 %v100_v24, %s1770_s9 }
  0xa3   :  { %v2005_v35 = vpop.permute.xlu1 %171 }
  0xa4   :  { %v170_v36 = vpop.permute.xlu0 %169  ;;  %v176_v32 = vadd.f32 %v2005_v35, %v148_v54 }
  0xa5   :  { %v2007_v37 = vpop.permute.xlu2 %269  ;;  %v175_v19 = vadd.f32 %v170_v36, %v147_v0  ;;  %v327_v0 = vstv %s2085_s12  ;;  %s1595_s12 = sld [smem:[#allocation10 + $0x11]] }
  0xa6   :  { %v190_v35 = vadd.f32 %v188_v1, %v176_v32 }
  0xa7   :  { %v189_v36 = vadd.f32 %v187_v7, %v175_v19 }
  0xab   :  { %v2009_v38 = vpop.permute.xlu1 %211 }
  0xac   :  { %v2011_v39 = vpop.permute.xlu0 %199 }
  0xad   :  { %v2013_v40 = vpop.permute.xlu2 %295 }
  0xb3   :  { %v2015_v41 = vpop.permute.xlu1 %227 }
  0xb4   :  { %v226_v43 = vpop.permute.xlu0 %225 }
  0xb5   :  { %v2017_v45 = vpop.permute.xlu2 %311  ;;  %v231_v21 = vadd.f32 %v226_v43, %v203_v17  ;;  %v162_v43 = vadd.f32 %v1971_v11, %v134_v23  ;;  %v217_v11 = vadd.f32 %v2009_v38, %v189_v36  ;;  %v218_v23 = vadd.f32 %v1994_v28, %v190_v35 }
  0xb6   :  { %v323_v28 = vmul.f32 %v1915_v42, %v321_v58  ;;  %v397_v36 = vstv %s2101_s14  ;;  %s1599_s14 = sld [smem:[#allocation10 + $0x15]] }
  0xb7   :  { %v253_v51 = vadd.f32 %v251_v22, %v231_v21  ;;  %v184_v62 = vadd.f32 %v182_v33, %v162_v43  ;;  %v461_v43 = vstv %s2092_s13  ;;  %s1597_s13 = sld [smem:[#allocation10 + $0x14]] }
  0xb8   :  { %v463_v35 = vmul.f32 %v1977_v13, %v461_v43 }
  0xb9   :  { %v204_v2 = vadd.f32 %v2011_v39, %v184_v62  ;;  %v329_v62 = vmul.f32 %v1915_v42, %v327_v0 }
  0xbb   :  { %v268_v46 = vpop.permute.xlu1 %267  ;;  %v232_v9 = vadd.f32 %v2015_v41, %v204_v2 }
  0xbc   :  { %v2019_v47 = vpop.permute.xlu0 %241  ;;  %v273_v53 = vadd.f32 %v268_v46, %v253_v51 }
  0xbd   :  { %v2021_v48 = vpop.permute.xlu2 %352  ;;  %v254_v18 = vadd.f32 %v252_v12, %v232_v9  ;;  %v246_v25 = vadd.f32 %v2019_v47, %v218_v23 }
  0xbe   :  { %v301_v46 = vadd.f32 %v2013_v40, %v273_v53  ;;  %v245_v40 = vadd.f32 %v2003_v34, %v217_v11  ;;  %v398_v11 = vmul.f32 %v1940_v56, %v397_v36 }
  0xbf   :  { %v274_v27 = vadd.f32 %v2007_v37, %v254_v18 }
  0xc0   :  { %v324_v3 = vadd.f32 %v322_v61, %v301_v46  ;;  %v259_v41 = vadd.f32 %v257_v15, %v245_v40  ;;  %v393_v61 = vmul.f32 %v1948_v60, %v391_v20  ;;  %v467_v15 = vstv %s2120_s17  ;;  %s2349_s17 = sld [smem:[#allocation7 + $0xd]] }
  0xc1   :  { %v468_v20 = vmul.f32 %v1967_v8, %v467_v15 }
  0xc3   :  { %v2023_v50 = vpop.permute.xlu1 %283 }
  0xc4   :  { %v2026_v52 = vpop.permute.xlu0 %281 }
  0xc5   :  { %v2030_v55 = vpop.permute.xlu2 %368  ;;  %v287_v34 = vadd.f32 %v2026_v52, %v259_v41 }
  0xcb   :  { %v2032_v57 = vpop.permute.xlu1 %309 }
  0xcc   :  { %v2034_v59 = vpop.permute.xlu0 %297  ;;  %v315_v30 = vadd.f32 %v2032_v57, %v287_v34 }
  0xcd   :  { %v2046_v5 = vpop.permute.xlu2 %408  ;;  %v302_v7 = vadd.f32 %v2034_v59, %v274_v27  ;;  %v101_v59 = vld [vmem:[%s2758_s1 + $0x8] sm:$0xff]  ;;  %s1604_s1 = sld [smem:[#allocation7 + $0x1c]] }
  0xce   :  { %561 = vrot.lane.b32.xlu2 %v101_v59, %s1770_s9 }
  0xcf   :  { %v325_v24 = vadd.f32 %v323_v28, %v302_v7 }
  0xd3   :  { %v2044_v4 = vpop.permute.xlu1 %340 }
  0xd4   :  { %v339_v10 = vpop.permute.xlu0 %338  ;;  %v345_v54 = vadd.f32 %v2044_v4, %v325_v24 }
  0xd5   :  { %v2061_v49 = vpop.permute.xlu2 %424  ;;  %v344_v17 = vadd.f32 %v339_v10, %v324_v3  ;;  %v258_v10 = vmul.f32 %v1895_v31, %v256_v6 }
  0xd6   :  { %v373_v4 = vadd.f32 %v2030_v55, %v345_v54  ;;  %v399_v55 = vmul.f32 %v1948_v60, %v397_v36  ;;  %v469_v60 = vmul.f32 %v1977_v13, %v467_v15  ;;  %v534_v13 = vld [vmem:[%s2757_s0 + $0x1] sm:$0xff]  ;;  %v721_v15 = vstv %s1587_s27  ;;  %s604_s27 = sld [smem:[#allocation10]] }
  0xd7   :  { %v260_v51 = vadd.f32 %v258_v10, %v246_v25  ;;  %v1573_v36 = vld [vmem:[%s2757_s0 + $0x21] sm:$0xff] }
  0xd8   :  { %v395_v12 = vadd.f32 %v393_v61, %v373_v4  ;;  %v665_v61 = vstv %s1583_s2  ;;  %s2269_s2 = sld [smem:[#allocation10 + $0x20]] }
  0xd9   :  { %v288_v53 = vadd.f32 %v2023_v50, %v260_v51 }
  0xdb   :  { %v367_v26 = vpop.permute.xlu1 %366 }
  0xdc   :  { %v2057_v29 = vpop.permute.xlu0 %354  ;;  %v372_v21 = vadd.f32 %v367_v26, %v344_v17  ;;  %v328_v26 = vmul.f32 %v1920_v44, %v327_v0  ;;  %v462_v44 = vmul.f32 %v1967_v8, %v461_v43  ;;  %v535_v43 = vld [vmem:[%s2757_s0 + $0x9] sm:$0xff] }
  0xdd   :  { %v2087_v38 = vpop.permute.xlu2 %450 }
  0xde   :  { %v394_v19 = vadd.f32 %v392_v16, %v372_v21  ;;  %v330_v47 = vadd.f32 %v328_v26, %v315_v30 }
  0xe0   :  { %v414_v31 = vadd.f32 %v2046_v5, %v394_v19  ;;  %v358_v58 = vadd.f32 %v2021_v48, %v330_v47  ;;  %v316_v5 = vadd.f32 %v2017_v45, %v288_v53 }
  0xe2   :  { %v331_v6 = vadd.f32 %v329_v62, %v316_v5 }
  0xe3   :  { %v2074_v14 = vpop.permute.xlu1 %382 }
  0xe4   :  { %v381_v63 = vpop.permute.xlu0 %380  ;;  %v359_v42 = vadd.f32 %v2057_v29, %v331_v6  ;;  %v689_v6 = vstv %s1584_s4  ;;  %s2276_s4 = sld [smem:[#allocation10 + $0x1]] }
  0xe5   :  { %v481_v52 = vpop.permute.xlu2 %480  ;;  %v386_v50 = vadd.f32 %v381_v63, %v358_v58 }
  0xe6   :  { %v387_v56 = vadd.f32 %v2074_v14, %v359_v42 }
  0xe7   :  { %v400_v9 = vadd.f32 %v398_v11, %v386_v50  ;;  %v637_v50 = vstv %s1581_s22  ;;  %s2254_s22 = sld [smem:[#allocation7 + $0x1]] }
  0xe8   :  { %v401_v29 = vadd.f32 %v399_v55, %v387_v56 }
  0xea   :  { %v429_v16 = vadd.f32 %v2061_v49, %v401_v29  ;;  %v1771_v49 = vmov 0.0  }
  0xeb   :  { %v423_v39 = vpop.permute.xlu1 %422  ;;  %529 = vst.msk [vmem:[#allocation2] sm:$0x1] %vm528_vm0, %v1771_v49 }
  0xec   :  { %v411_v22 = vpop.permute.xlu0 %410  ;;  %v428_v40 = vadd.f32 %v423_v39, %v400_v9  ;;  %530 = vst.msk [vmem:[#allocation2 + $0x11] sm:$0x1] %vm528_vm0, %v1771_v49 }
  0xed   :  { %v507_v1 = vpop.permute.xlu2 %506  ;;  %v415_v63 = vadd.f32 %v411_v22, %v395_v12  ;;  %532 = vst.msk [vmem:[#allocation2 + $0x18] sm:$0x1] %vm528_vm0, %v1771_v49  ;;  %v717_v12 = vstv %s1586_s6  ;;  %s2287_s6 = sld [smem:[#allocation11 + $0x1]] }
  0xee   :  { %v456_v18 = vadd.f32 %v2087_v38, %v428_v40  ;;  %533 = vst.msk [vmem:[#allocation2 + $0x29] sm:$0x1] %vm528_vm0, %v1771_v49  ;;  %v693_v40 = vstv %s1585_s26  ;;  %s2296_s26 = sld [smem:[#allocation7 + $0x21]] }
  0xf0   :  { %v470_v39 = vadd.f32 %v468_v20, %v456_v18  ;;  %v775_v20 = vstv %s1593_s28  ;;  %s2502_s28 = sld [smem:[#allocation10 + $0x1f]] }
  0xf3   :  { %v439_v37 = vpop.permute.xlu1 %438 }
  0xf4   :  { %v437_v33 = vpop.permute.xlu0 %436  ;;  %v443_v3 = vadd.f32 %v439_v37, %v415_v63  ;;  %v1572_v37 = vld [vmem:[%s2757_s0 + $0x19] sm:$0xff] }
  0xf5   :  { %v442_v57 = vadd.f32 %v437_v33, %v414_v31  ;;  %v523_v0 = vpop.permute.xlu2 %522 }
  0xf6   :  { %v465_v21 = vadd.f32 %v463_v35, %v443_v3 }
  0xf7   :  { %v464_v46 = vadd.f32 %v462_v44, %v442_v57 }
  0xf8   :  { %v485_v14 = vadd.f32 %v481_v52, %v465_v21  ;;  %v633_v52 = vstv %s2141_s18  ;;  %s1605_s18 = sld [smem:[#allocation10 + $0x1c]] }
  0xfb   :  { %v479_v32 = vpop.permute.xlu1 %478 }
  0xfc   :  { %v484_v48 = vadd.f32 %v479_v32, %v464_v46  ;;  %v453_v2 = vpop.permute.xlu0 %452  ;;  %v661_v32 = vstv %s1582_s25  ;;  %s2273_s25 = sld [smem:[#allocation7 + $0x20]] }
  0xfd   :  { %v457_v34 = vadd.f32 %v453_v2, %v429_v16 }
  0xfe   :  { %v512_v45 = vadd.f32 %v507_v1, %v484_v48 }
  0xff   :  { %v471_v38 = vadd.f32 %v469_v60, %v457_v34 }
 0x100   :  { %538 = vrot.lane.b32.xlu0 %v512_v45, %s1770_s9 }
 0x103   :  { %v495_v17 = vpop.permute.xlu1 %494 }
 0x104   :  { %v493_v41 = vpop.permute.xlu0 %492  ;;  %v499_v8 = vadd.f32 %v495_v17, %v471_v38 }
 0x105   :  { %v498_v23 = vadd.f32 %v493_v41, %v470_v39  ;;  %v771_v41 = vstv %s1592_s29  ;;  %s2519_s29 = sld [smem:[#allocation10 + $0x23]] }
 0x106   :  { %v527_v30 = vadd.f32 %v523_v0, %v499_v8  ;;  %v831_v8 = vstv %s1597_s13  ;;  %s2324_s13 = sld [smem:[#allocation10 + $0xc]] }
 0x10b   :  { %v521_v22 = vpop.permute.xlu1 %520 }
 0x10c   :  { %v526_v27 = vadd.f32 %v521_v22, %v498_v23  ;;  %v509_v25 = vpop.permute.xlu0 %508  ;;  %v799_v23 = vstv %s1594_s30  ;;  %v827_v22 = vstv %s1596_s11  ;;  %s612_s30 = sld [smem:[#allocation11]] }
 0x10d   :  { %v513_v10 = vadd.f32 %v509_v25, %v485_v14  ;;  %s2313_s11 = sld [smem:[#allocation7 + $0x6]] }
 0x10e   :  { %575 = vrot.lane.b32.xlu0 %v526_v27, %s1770_s9  ;;  %v803_v27 = vstv %s1595_s12  ;;  %s2318_s12 = sld [smem:[#allocation10 + $0x21]] }
 0x10f   :  { %540 = vrot.lane.b32.xlu1 %v513_v10, %s1770_s9 }
 0x113   :  { %v560_v19 = vpop.permute.xlu1 %559 }
 0x117   :  { %577 = vrot.lane.b32.xlu1 %v527_v30, %s1770_s9 }
 0x128   :  { %v562_v24 = vpop.permute.xlu2 %561 }
 0x172   :  { %v539_v26 = vpop.permute.xlu0 %538 }
 0x173   :  { %v544_v7 = vadd.f32 %v539_v26, %v534_v13  ;;  %v859_v26 = vstv %s1599_s14  ;;  %s2573_s14 = sld [smem:[#allocation10 + $0x2]] }
 0x175   :  { %v565_v28 = vmul.f32 %v560_v19, %v544_v7  ;;  %548 = vrot.lane.b32.xlu2 %v544_v7, %s1768_s7 }
 0x177   :  { %568 = vst.msk [vmem:[#allocation2 + $0x1] sm:$0xff] %vm567_vm1, %v565_v28 }
 0x17e   :  { %v2146_v51 = vld [vmem:[#allocation2] sm:$0xff] }
 0x17f   :  { %v634_v47 = vmul.f32 %v633_v52, %v2146_v51  ;;  %v638_v4 = vmul.f32 %v637_v50, %v2146_v51  ;;  %v666_v1 = vmul.f32 %v665_v61, %v2146_v51  ;;  %v662_v48 = vmul.f32 %v661_v32, %v2146_v51  ;;  %v2196_v18 = vld [vmem:[#allocation2 + $0x1] sm:$0xff] }
 0x180   :  { %v576_v31 = vpop.permute.xlu0 %575  ;;  %v690_v42 = vmul.f32 %v689_v6, %v2146_v51  ;;  %v718_v56 = vmul.f32 %v717_v12, %v2146_v51  ;;  %v694_v55 = vmul.f32 %v693_v40, %v2146_v51  ;;  %v722_v17 = vmul.f32 %v721_v15, %v2146_v51 }
 0x181   :  { %v581_v33 = vadd.f32 %v1572_v37, %v576_v31  ;;  %v541_v53 = vpop.permute.xlu1 %540  ;;  %642 = vrot.lane.b32.xlu1 %v634_v47, %s1768_s7  ;;  %v776_v29 = vmul.f32 %v775_v20, %v2196_v18  ;;  %v772_v21 = vmul.f32 %v771_v41, %v2196_v18  ;;  %v800_v60 = vmul.f32 %v799_v23, %v2196_v18 }
 0x182   :  { %v545_v57 = vadd.f32 %v541_v53, %v535_v43  ;;  %v828_v25 = vmul.f32 %v827_v22, %v2196_v18  ;;  %v804_v10 = vmul.f32 %v803_v27, %v2196_v18  ;;  %v832_v13 = vmul.f32 %v831_v8, %v2196_v18 }
 0x183   :  { %v594_v44 = vmul.f32 %v581_v33, %v560_v19  ;;  %585 = vrot.lane.b32.xlu2 %v581_v33, %s1768_s7  ;;  %v855_v19 = vstv %s1598_s15  ;;  %v860_v7 = vmul.f32 %v859_v26, %v2196_v18  ;;  %v909_v43 = vstv %s1604_s1  ;;  %s2354_s1 = sld [smem:[#allocation7 + $0xc]] }
 0x184   :  { %v566_v54 = vmul.f32 %v562_v24, %v545_v57  ;;  %550 = vrot.lane.b32.xlu0 %v545_v57, %s1768_s7  ;;  %v856_v28 = vmul.f32 %v855_v19, %v2196_v18  ;;  %v937_v57 = vstv %s2234_s3  ;;  %s2360_s3 = sld [smem:[#allocation10 + $0x7]] }
 0x185   :  { %596 = vst.msk [vmem:[#allocation2 + $0x19] sm:$0xff] %vm567_vm1, %v594_v44  ;;  %v913_v44 = vstv %s1605_s18  ;;  %s2366_s18 = sld [smem:[#allocation7 + $0x7]] }
 0x186   :  { %569 = vst.msk [vmem:[#allocation2 + $0x9] sm:$0xff] %vm567_vm1, %v566_v54  ;;  %v601_v54 = vstv %s2239_s19  ;;  %s2385_s19 = sld [smem:[#allocation10 + $0xa]] }
 0x187   :  { %s2579_s15 = sld [smem:[#allocation7 + $0x16]] }
 0x189   :  { %v578_v59 = vpop.permute.xlu1 %577 }
 0x18a   :  { %v582_v58 = vadd.f32 %v1573_v36, %v578_v59 }
 0x18c   :  { %v595_v5 = vmul.f32 %v582_v58, %v562_v24  ;;  %587 = vrot.lane.b32.xlu0 %v582_v58, %s1768_s7 }
 0x18d   :  { %v2164_v62 = vld [vmem:[#allocation2 + $0x8] sm:$0xff] }
 0x18e   :  { %597 = vst.msk [vmem:[#allocation2 + $0x21] sm:$0xff] %vm567_vm1, %v595_v5  ;;  %v639_v11 = vmul.f32 %v637_v50, %v2164_v62  ;;  %v635_v46 = vmul.f32 %v633_v52, %v2164_v62  ;;  %v663_v2 = vmul.f32 %v661_v32, %v2164_v62  ;;  %v691_v9 = vmul.f32 %v689_v6, %v2164_v62  ;;  %v2201_v39 = vld [vmem:[#allocation2 + $0x9] sm:$0xff] }
 0x18f   :  { %v667_v45 = vmul.f32 %v665_v61, %v2164_v62  ;;  %v695_v63 = vmul.f32 %v693_v40, %v2164_v62  ;;  %v723_v3 = vmul.f32 %v721_v15, %v2164_v62  ;;  %v719_v35 = vmul.f32 %v717_v12, %v2164_v62  ;;  %v2236_v37 = vld [vmem:[#allocation2 + $0xa] sm:$0xff]  ;;  %v2247_v53 = vld [vmem:[#allocation2 + $0x2] sm:$0xff] }
 0x190   :  { %654 = vrot.lane.b32.xlu1 %v639_v11, %s1768_s7  ;;  %644 = vrot.lane.b32.xlu2 %v635_v46, %s1768_s7  ;;  %v773_v16 = vmul.f32 %v771_v41, %v2201_v39  ;;  %v801_v14 = vmul.f32 %v799_v23, %v2201_v39  ;;  %v777_v34 = vmul.f32 %v775_v20, %v2201_v39  ;;  %v609_v5 = vstv %s2251_s21  ;;  %s2410_s21 = sld [smem:[#allocation10 + $0xb]] }
 0x191   :  { %v805_v38 = vmul.f32 %v803_v27, %v2201_v39  ;;  %v833_v0 = vmul.f32 %v831_v8, %v2201_v39  ;;  %v829_v30 = vmul.f32 %v827_v22, %v2201_v39  ;;  %v857_v52 = vmul.f32 %v855_v19, %v2201_v39  ;;  %v2334_v19 = vld [vmem:[#allocation2 + $0x18] sm:$0xff] }
 0x192   :  { %v911_v31 = vmul.f32 %v909_v43, %v2236_v37  ;;  %v861_v33 = vmul.f32 %v859_v26, %v2201_v39  ;;  %v910_v24 = vmul.f32 %v909_v43, %v2247_v53  ;;  %v603_v36 = vmul.f32 %v601_v54, %v2164_v62 }
 0x193   :  { %v938_v59 = vmul.f32 %v937_v57, %v2247_v53  ;;  %v914_v58 = vmul.f32 %v913_v44, %v2247_v53  ;;  %v915_v46 = vmul.f32 %v913_v44, %v2236_v37  ;;  %v941_v32 = vstv %s1607_s23  ;;  %s2430_s23 = sld [smem:[#allocation10 + $0x12]] }
 0x194   :  { %652 = vrot.lane.b32.xlu0 %v638_v4, %s1768_s7  ;;  %v611_v50 = vadd.f32 %v609_v5, %v603_v36  ;;  %v617_v4 = vstv %s2254_s22  ;;  %v625_v6 = vstv %s2262_s24  ;;  %v942_v12 = vmul.f32 %v941_v32, %v2247_v53  ;;  %s2427_s22 = sld [smem:[#allocation10 + $0x13]] }
 0x195   :  { %v965_v15 = vstv %s2273_s25  ;;  %v605_v22 = vstv %s604_s27  ;;  %v613_v8 = vstv %s612_s30  ;;  %s2441_s24 = sld [smem:[#allocation7 + $0x18]] }
 0x196   :  { %v607_v27 = vmul.f32 %v605_v22, %v2164_v62  ;;  %s2462_s25 = sld [smem:[#allocation7 + $0x19]] }
 0x197   :  { %s2491_s27 = sld [smem:[#allocation10 + $0x18]] }
 0x198   :  { %680 = vrot.lane.b32.xlu1 %v666_v1, %s1768_s7  ;;  %670 = vrot.lane.b32.xlu2 %v662_v48, %s1768_s7  ;;  %v618_v1 = vmul.f32 %v617_v4, %v2146_v51  ;;  %v943_v48 = vmul.f32 %v941_v32, %v2236_v37  ;;  %s2525_s30 = sld [smem:[#allocation10 + $0x22]] }
 0x19c   :  { %672 = vrot.lane.b32.xlu0 %v663_v2, %s1768_s7  ;;  %v939_v2 = vmul.f32 %v937_v57, %v2236_v37  ;;  %v751_v57 = vstv %s2324_s13  ;;  %s2565_s13 = sld [smem:[#allocation7 + $0x12]] }
 0x1a0   :  { %700 = vrot.lane.b32.xlu1 %v691_v9, %s1769_s10  ;;  %682 = vrot.lane.b32.xlu2 %v667_v45, %s1768_s7  ;;  %v602_v9 = vmul.f32 %v601_v54, %v2146_v51  ;;  %v626_v45 = vadd.f32 %v625_v6, %v618_v1 }
 0x1a2   :  { %v610_v40 = vadd.f32 %v609_v5, %v602_v9 }
 0x1a4   :  { %698 = vrot.lane.b32.xlu0 %v690_v42, %s1769_s10 }
 0x1a8   :  { %726 = vrot.lane.b32.xlu1 %v718_v56, %s1769_s10  ;;  %708 = vrot.lane.b32.xlu2 %v694_v55, %s1769_s10 }
 0x1ac   :  { %710 = vrot.lane.b32.xlu0 %v695_v63, %s1769_s10  ;;  %v969_v63 = vstv %s2269_s2  ;;  %s2458_s2 = sld [smem:[#allocation10 + $0x16]] }
 0x1ad   :  { %v970_v41 = vmul.f32 %v969_v63, %v2247_v53 }
 0x1b0   :  { %738 = vrot.lane.b32.xlu1 %v723_v3, %s1769_s10  ;;  %728 = vrot.lane.b32.xlu2 %v719_v35, %s1769_s10  ;;  %v621_v35 = vstv %s2276_s4  ;;  %s2472_s4 = sld [smem:[#allocation10 + $0x17]] }
 0x1b4   :  { %736 = vrot.lane.b32.xlu0 %v722_v17, %s1769_s10  ;;  %v623_v17 = vmul.f32 %v621_v35, %v2164_v62 }
 0x1b8   :  { %790 = vrot.lane.b32.xlu1 %v776_v29, %s1768_s7  ;;  %780 = vrot.lane.b32.xlu2 %v772_v21, %s1768_s7  ;;  %v966_v29 = vmul.f32 %v965_v15, %v2247_v53  ;;  %v629_v21 = vstv %s2287_s6  ;;  %s2477_s6 = sld [smem:[#allocation10 + $0x1e]] }
 0x1bc   :  { %782 = vrot.lane.b32.xlu0 %v773_v16, %s1768_s7  ;;  %v631_v16 = vadd.f32 %v629_v21, %v623_v17  ;;  %v1075_v17 = vstv %s2366_s18  ;;  %s2618_s18 = sld [smem:[#allocation7 + $0x1f]] }
 0x1c0   :  { %810 = vrot.lane.b32.xlu1 %v801_v14, %s1768_s7  ;;  %792 = vrot.lane.b32.xlu2 %v777_v34, %s1768_s7  ;;  %v967_v14 = vmul.f32 %v965_v15, %v2236_v37  ;;  %v1079_v15 = vstv %s2360_s3  ;;  %s2614_s3 = sld [smem:[#allocation7 + $0x3]] }
 0x1c4   :  { %808 = vrot.lane.b32.xlu0 %v800_v60, %s1768_s7  ;;  %v993_v60 = vstv %s2296_s26  ;;  %s2486_s26 = sld [smem:[#allocation10 + $0x19]] }
 0x1c5   :  { %v994_v26 = vmul.f32 %v993_v60, %v2247_v53 }
 0x1c8   :  { %836 = vrot.lane.b32.xlu1 %v828_v25, %s1769_s10  ;;  %818 = vrot.lane.b32.xlu2 %v804_v10, %s1768_s7  ;;  %v995_v10 = vmul.f32 %v993_v60, %v2236_v37 }
 0x1cc   :  { %820 = vrot.lane.b32.xlu0 %v805_v38, %s1768_s7  ;;  %v971_v38 = vmul.f32 %v969_v63, %v2236_v37  ;;  %v747_v63 = vstv %s2354_s1  ;;  %s2607_s1 = sld [smem:[#allocation7 + $0x17]] }
 0x1cf   :  { %v549_v49 = vpop.permute.xlu2 %548 }
 0x1d0   :  { %555 = vst.msk [vmem:[%s2765_s8] sm:$0xff] %vm554_vm2, %v549_v49  ;;  %848 = vrot.lane.b32.xlu1 %v833_v0, %s1769_s10  ;;  %838 = vrot.lane.b32.xlu2 %v829_v30, %s1769_s10  ;;  %v615_v0 = vadd.f32 %v613_v8, %v607_v27  ;;  %v606_v30 = vmul.f32 %v605_v22, %v2146_v51 }
 0x1d2   :  { %v614_v43 = vadd.f32 %v613_v8, %v606_v30 }
 0x1d4   :  { %846 = vrot.lane.b32.xlu0 %v832_v13, %s1769_s10 }
 0x1d8   :  { %874 = vrot.lane.b32.xlu1 %v860_v7, %s1769_s10  ;;  %864 = vrot.lane.b32.xlu2 %v856_v28, %s1769_s10  ;;  %v1047_v28 = vstv %s2313_s11  ;;  %s2541_s11 = sld [smem:[#allocation7 + $0xb]] }
 0x1dc   :  { %866 = vrot.lane.b32.xlu0 %v857_v52, %s1769_s10  ;;  %v997_v52 = vstv %s2318_s12  ;;  %s2549_s12 = sld [smem:[#allocation7 + $0x2]] }
 0x1dd   :  { %v586_v47 = vpop.permute.xlu2 %585 }
 0x1de   :  { %1574 = vst.msk [vmem:[%s2765_s8 + $0x10] sm:$0xff] %vm554_vm2, %v586_v47  ;;  %v622_v47 = vmul.f32 %v621_v35, %v2146_v51  ;;  %v619_v51 = vmul.f32 %v617_v4, %v2164_v62  ;;  %v1051_v4 = vstv %s2342_s16  ;;  %s2584_s16 = sld [smem:[#allocation7 + $0x13]] }
 0x1e0   :  { %920 = vrot.lane.b32.xlu1 %v911_v31, %s1768_s7  ;;  %876 = vrot.lane.b32.xlu2 %v861_v33, %s1769_s10  ;;  %v1048_v33 = vmul.f32 %v1047_v28, %v2334_v19  ;;  %v630_v36 = vadd.f32 %v629_v21, %v622_v47  ;;  %v627_v62 = vadd.f32 %v625_v6, %v619_v51 }
 0x1e1   :  { %v1052_v6 = vmul.f32 %v1051_v4, %v2334_v19 }
 0x1e4   :  { %918 = vrot.lane.b32.xlu0 %v910_v24, %s1768_s7  ;;  %v998_v24 = vmul.f32 %v997_v52, %v2247_v53 }
 0x1e8   :  { %946 = vrot.lane.b32.xlu1 %v938_v59, %s1768_s7  ;;  %928 = vrot.lane.b32.xlu2 %v914_v58, %s1768_s7  ;;  %v752_v59 = vmul.f32 %v751_v57, %v2196_v18 }
 0x1ea   :  { %v645_v11 = vpop.permute.xlu2 %644 }
 0x1eb   :  { %v2271_v61 = vadd.f32 %v645_v11, %v611_v50  ;;  %v999_v50 = vmul.f32 %v997_v52, %v2236_v37  ;;  %v2362_v11 = vld [vmem:[#allocation2 + $0x20] sm:$0xff] }
 0x1ec   :  { %930 = vrot.lane.b32.xlu0 %v915_v46, %s1768_s7 }
 0x1f0   :  { %958 = vrot.lane.b32.xlu1 %v943_v48, %s1768_s7  ;;  %948 = vrot.lane.b32.xlu2 %v939_v2, %s1768_s7  ;;  %v1053_v48 = vmul.f32 %v1051_v4, %v2362_v11  ;;  %v1049_v2 = vmul.f32 %v1047_v28, %v2362_v11  ;;  %v1103_v28 = vstv %s2397_s5  ;;  %v2448_v4 = vld [vmem:[#allocation2 + $0x19] sm:$0xff]  ;;  %s2641_s5 = sld [smem:[#allocation7 + $0x22]] }
 0x1f2   :  { %v671_v42 = vpop.permute.xlu2 %670 }
 0x1f3   :  { %v2292_v56 = vadd.f32 %v671_v42, %v626_v45  ;;  %v643_v55 = vpop.permute.xlu1 %642  ;;  %v759_v45 = vstv %s2349_s17  ;;  %s2592_s17 = sld [smem:[#allocation10 + $0x3]] }
 0x1f4   :  { %956 = vrot.lane.b32.xlu0 %v942_v12, %s1768_s7  ;;  %v2299_v3 = vadd.f32 %v643_v55, %v610_v40  ;;  %v761_v12 = vmul.f32 %v759_v45, %v2201_v39 }
 0x1f6   :  { %v551_v20 = vpop.permute.xlu0 %550 }
 0x1f7   :  { %556 = vst.msk [vmem:[%s2765_s8 + $0x8] sm:$0xff] %vm554_vm2, %v551_v20  ;;  %v749_v20 = vmul.f32 %v747_v63, %v2201_v39 }
 0x1f8   :  { %984 = vrot.lane.b32.xlu1 %v970_v41, %s1769_s10  ;;  %974 = vrot.lane.b32.xlu2 %v966_v29, %s1769_s10 }
 0x1fa   :  { %v683_v23 = vpop.permute.xlu2 %682 }
 0x1fb   :  { %v2315_v34 = vadd.f32 %v683_v23, %v631_v16  ;;  %v1080_v16 = vmul.f32 %v1079_v15, %v2334_v19  ;;  %v1076_v23 = vmul.f32 %v1075_v17, %v2334_v19 }
 0x1fc   :  { %976 = vrot.lane.b32.xlu0 %v967_v14, %s1769_s10  ;;  %v748_v14 = vmul.f32 %v747_v63, %v2196_v18 }
 0x1fe   :  { %v588_v25 = vpop.permute.xlu0 %587 }
 0x1ff   :  { %1575 = vst.msk [vmem:[%s2765_s8 + $0x18] sm:$0xff] %vm554_vm2, %v588_v25  ;;  %v1077_v25 = vmul.f32 %v1075_v17, %v2362_v11 }
 0x200   :  { %1004 = vrot.lane.b32.xlu1 %v995_v10, %s1769_s10  ;;  %986 = vrot.lane.b32.xlu2 %v971_v38, %s1769_s10  ;;  %v1107_v38 = vstv %s2385_s19  ;;  %s2621_s19 = sld [smem:[#allocation7 + $0x1e]] }
 0x202   :  { %v709_v49 = vpop.permute.xlu2 %708  ;;  %v655_v13 = vpop.permute.xlu1 %654 }
 0x203   :  { %v2336_v7 = vadd.f32 %v655_v13, %v615_v0  ;;  %v1081_v13 = vmul.f32 %v1079_v15, %v2362_v11 }
 0x204   :  { %1002 = vrot.lane.b32.xlu0 %v994_v26, %s1769_s10 }
 0x206   :  { %v653_v31 = vpop.permute.xlu0 %652 }
 0x207   :  { %v658_v44 = vadd.f32 %v653_v31, %v614_v43  ;;  %v1104_v31 = vmul.f32 %v1103_v28, %v2334_v19 }
 0x208   :  { %1056 = vrot.lane.b32.xlu1 %v1048_v33, %s1768_s7  ;;  %1012 = vrot.lane.b32.xlu2 %v998_v24, %s1769_s10  ;;  %v763_v33 = vstv %s2402_s20  ;;  %s1646_s20 = sld [smem:[#allocation7 + $0x23]] }
 0x209   :  { %v714_v54 = vadd.f32 %v709_v49, %v658_v44  ;;  %v1108_v49 = vmul.f32 %v1107_v38, %v2334_v19  ;;  %v1135_v44 = vstv %s2410_s21  ;;  %s2659_s21 = sld [smem:[#allocation10 + $0xe]] }
 0x20a   :  { %v729_v58 = vpop.permute.xlu2 %728  ;;  %v681_v5 = vpop.permute.xlu1 %680  ;;  %v1137_v51 = vmul.f32 %v1135_v44, %v2362_v11 }
 0x20b   :  { %v2364_v46 = vadd.f32 %v681_v5, %v630_v36  ;;  %v2368_v32 = vadd.f32 %v752_v59, %v714_v54  ;;  %v1109_v59 = vmul.f32 %v1107_v38, %v2362_v11 }
 0x20c   :  { %1014 = vrot.lane.b32.xlu0 %v999_v50, %s1769_s10 }
 0x20e   :  { %v673_v1 = vpop.permute.xlu0 %672 }
 0x20f   :  { %v677_v9 = vadd.f32 %v673_v1, %v627_v62  ;;  %v1136_v62 = vmul.f32 %v1135_v44, %v2334_v19  ;;  %v2521_v44 = vld [vmem:[#allocation2 + $0x22] sm:$0xff] }
 0x210   :  { %1068 = vrot.lane.b32.xlu1 %v1053_v48, %s1768_s7  ;;  %1058 = vrot.lane.b32.xlu2 %v1049_v2, %s1768_s7  ;;  %v1217_v48 = vstv %s2427_s22  ;;  %v1189_v2 = vstv %s2430_s23  ;;  %s2676_s22 = sld [smem:[#allocation7 + $0xe]] }
 0x211   :  { %v733_v42 = vadd.f32 %v729_v58, %v677_v9  ;;  %v1218_v9 = vmul.f32 %v1217_v48, %v2448_v4  ;;  %s1627_s23 = sld [smem:[#allocation10 + $0xf]] }
 0x212   :  { %v781_v40 = vpop.permute.xlu2 %780  ;;  %v701_v55 = vpop.permute.xlu1 %700 }
 0x213   :  { %v705_v35 = vadd.f32 %v701_v55, %v2271_v61  ;;  %v2388_v41 = vadd.f32 %v761_v12, %v733_v42  ;;  %v885_v42 = vstv %s2441_s24  ;;  %v2465_v12 = vld [vmem:[#allocation2 + $0x21] sm:$0xff]  ;;  %s1637_s24 = sld [smem:[#allocation10 + $0x1a]] }
 0x214   :  { %1066 = vrot.lane.b32.xlu0 %v1052_v6, %s1768_s7  ;;  %v887_v55 = vmul.f32 %v885_v42, %v2236_v37  ;;  %v1191_v15 = vmul.f32 %v1189_v2, %v2465_v12 }
 0x215   :  { %v2391_v29 = vadd.f32 %v749_v20, %v705_v35  ;;  %v1245_v20 = vstv %s2458_s2  ;;  %s2699_s2 = sld [smem:[#allocation7 + $0xf]] }
 0x216   :  { %v699_v21 = vpop.permute.xlu0 %698 }
 0x217   :  { %v704_v61 = vadd.f32 %v699_v21, %v2299_v3  ;;  %v760_v3 = vmul.f32 %v759_v45, %v2196_v18  ;;  %v1190_v45 = vmul.f32 %v1189_v2, %v2448_v4  ;;  %v1247_v21 = vmul.f32 %v1245_v20, %v2465_v12 }
 0x218   :  { %1094 = vrot.lane.b32.xlu1 %v1080_v16, %s1768_s7  ;;  %1084 = vrot.lane.b32.xlu2 %v1076_v23, %s1768_s7  ;;  %v1219_v16 = vmul.f32 %v1217_v48, %v2465_v12  ;;  %v897_v23 = vstv %s2462_s25  ;;  %s1636_s25 = sld [smem:[#allocation7 + $0x1a]] }
 0x219   :  { %v754_v60 = vadd.f32 %v748_v14, %v704_v61  ;;  %v898_v61 = vmul.f32 %v897_v23, %v2247_v53 }
 0x21a   :  { %v793_v22 = vpop.permute.xlu2 %792  ;;  %v727_v27 = vpop.permute.xlu1 %726 }
 0x21b   :  { %v732_v10 = vadd.f32 %v727_v27, %v2292_v56  ;;  %v2407_v8 = vadd.f32 %v781_v40, %v754_v60  ;;  %v753_v56 = vmul.f32 %v751_v57, %v2201_v39  ;;  %v1246_v27 = vmul.f32 %v1245_v20, %v2448_v4 }
 0x21c   :  { %1086 = vrot.lane.b32.xlu0 %v1077_v25, %s1768_s7  ;;  %v1273_v25 = vstv %s2472_s4  ;;  %s1638_s4 = sld [smem:[#allocation7 + $0x1b]] }
 0x21d   :  { %v2412_v0 = vadd.f32 %v760_v3, %v732_v10  ;;  %v2498_v10 = vld [vmem:[#allocation2 + $0x1a] sm:$0xff]  ;;  %v1327_v3 = vstv %s2477_s6 }
 0x21e   :  { %v711_v30 = vpop.permute.xlu0 %710 }
 0x21f   :  { %v715_v26 = vadd.f32 %v711_v30, %v2336_v7  ;;  %v765_v7 = vmul.f32 %v763_v33, %v2201_v39 }
 0x220   :  { %1122 = vrot.lane.b32.xlu1 %v1108_v49, %s1769_s10  ;;  %1096 = vrot.lane.b32.xlu2 %v1081_v13, %s1768_s7 }
 0x221   :  { %v757_v52 = vadd.f32 %v753_v56, %v715_v26  ;;  %v1328_v56 = vmul.f32 %v1327_v3, %v2498_v10  ;;  %v1274_v26 = vmul.f32 %v1273_v25, %v2448_v4 }
 0x222   :  { %v819_v43 = vpop.permute.xlu2 %818  ;;  %v739_v47 = vpop.permute.xlu1 %738 }
 0x223   :  { %v743_v24 = vadd.f32 %v739_v47, %v2315_v34  ;;  %v2433_v57 = vadd.f32 %v793_v22, %v757_v52  ;;  %v764_v34 = vmul.f32 %v763_v33, %v2196_v18  ;;  %v901_v52 = vstv %s2486_s26 }
 0x224   :  { %1112 = vrot.lane.b32.xlu0 %v1104_v31, %s1769_s10  ;;  %v903_v31 = vmul.f32 %v901_v52, %v2236_v37 }
 0x225   :  { %v2437_v54 = vadd.f32 %v765_v7, %v743_v24  ;;  %v1275_v7 = vmul.f32 %v1273_v25, %v2465_v12 }
 0x226   :  { %v737_v36 = vpop.permute.xlu0 %736 }
 0x227   :  { %v742_v39 = vadd.f32 %v737_v36, %v2364_v46 }
 0x228   :  { %1152 = vrot.lane.b32.xlu1 %v1137_v51, %s1769_s10  ;;  %1124 = vrot.lane.b32.xlu2 %v1109_v59, %s1769_s10  ;;  %v1355_v51 = vstv %s2502_s28 }
 0x229   :  { %v768_v58 = vadd.f32 %v764_v34, %v742_v39 }
 0x22a   :  { %v839_v5 = vpop.permute.xlu2 %838  ;;  %v791_v50 = vpop.permute.xlu1 %790 }
 0x22b   :  { %v2451_v1 = vadd.f32 %v791_v50, %v2368_v32  ;;  %v2455_v18 = vadd.f32 %v819_v43, %v768_v58  ;;  %v889_v43 = vstv %s2491_s27  ;;  %v1357_v58 = vmul.f32 %v1355_v51, %v2521_v44 }
 0x22c   :  { %1150 = vrot.lane.b32.xlu0 %v1136_v62, %s1769_s10  ;;  %v890_v50 = vmul.f32 %v889_v43, %v2247_v53 }
 0x22e   :  { %v783_v46 = vpop.permute.xlu0 %782 }
 0x22f   :  { %v787_v32 = vadd.f32 %v783_v46, %v2391_v29  ;;  %v1356_v46 = vmul.f32 %v1355_v51, %v2498_v10 }
 0x230   :  { %1232 = vrot.lane.b32.xlu1 %v1218_v9, %s1768_s7  ;;  %1204 = vrot.lane.b32.xlu2 %v1190_v45, %s1768_s7  ;;  %v1411_v9 = vstv %s2519_s29 }
 0x231   :  { %v843_v40 = vadd.f32 %v839_v5, %v787_v32  ;;  %v1329_v5 = vmul.f32 %v1327_v3, %v2521_v44  ;;  %v902_v32 = vmul.f32 %v901_v52, %v2247_v53 }
 0x232   :  { %v865_v6 = vpop.permute.xlu2 %864  ;;  %v811_v63 = vpop.permute.xlu1 %810 }
 0x233   :  { %v2475_v35 = vadd.f32 %v811_v63, %v2388_v41  ;;  %v2479_v17 = vadd.f32 %v887_v55, %v843_v40 }
 0x234   :  { %1206 = vrot.lane.b32.xlu0 %v1191_v15, %s1768_s7 }
 0x236   :  { %v809_v29 = vpop.permute.xlu0 %808 }
 0x237   :  { %v814_v41 = vadd.f32 %v809_v29, %v2412_v0  ;;  %v886_v0 = vmul.f32 %v885_v42, %v2247_v53  ;;  %v1383_v42 = vstv %s2525_s30 }
 0x238   :  { %1262 = vrot.lane.b32.xlu1 %v1247_v21, %s1769_s10  ;;  %1234 = vrot.lane.b32.xlu2 %v1219_v16, %s1768_s7  ;;  %v1384_v63 = vmul.f32 %v1383_v42, %v2498_v10  ;;  %v1385_v21 = vmul.f32 %v1383_v42, %v2521_v44 }
 0x239   :  { %v870_v14 = vadd.f32 %v865_v6, %v814_v41  ;;  %v1412_v6 = vmul.f32 %v1411_v9, %v2498_v10  ;;  %v1131_v41 = vstv %s2541_s11 }
 0x23a   :  { %v877_v60 = vpop.permute.xlu2 %876  ;;  %v837_v22 = vpop.permute.xlu1 %836 }
 0x23b   :  { %v842_v38 = vadd.f32 %v837_v22, %v2407_v8  ;;  %v2505_v30 = vadd.f32 %v898_v61, %v870_v14  ;;  %v1023_v61 = vstv %s2549_s12 }
 0x23c   :  { %1260 = vrot.lane.b32.xlu0 %v1246_v27, %s1769_s10  ;;  %v1024_v22 = vmul.f32 %v1023_v61, %v2334_v19 }
 0x23d   :  { %v2508_v49 = vadd.f32 %v886_v0, %v842_v38  ;;  %v1105_v38 = vmul.f32 %v1103_v28, %v2362_v11 }
 0x23e   :  { %v821_v13 = vpop.permute.xlu0 %820 }
 0x23f   :  { %v825_v8 = vadd.f32 %v821_v13, %v2437_v54  ;;  %v891_v54 = vmul.f32 %v889_v43, %v2236_v37 }
 0x240   :  { %1342 = vrot.lane.b32.xlu1 %v1328_v56, %s1768_s7  ;;  %1288 = vrot.lane.b32.xlu2 %v1274_v26, %s1769_s10  ;;  %v1133_v26 = vmul.f32 %v1131_v41, %v2362_v11 }
 0x241   :  { %v881_v47 = vadd.f32 %v877_v60, %v825_v8 }
 0x242   :  { %v929_v33 = vpop.permute.xlu2 %928  ;;  %v849_v24 = vpop.permute.xlu1 %848 }
 0x243   :  { %v853_v36 = vadd.f32 %v849_v24, %v2433_v57  ;;  %v2528_v59 = vadd.f32 %v903_v31, %v881_v47  ;;  %v1241_v24 = vstv %s2579_s15 }
 0x244   :  { %1290 = vrot.lane.b32.xlu0 %v1275_v7, %s1769_s10  ;;  %v1213_v7 = vstv %s2584_s16 }
 0x245   :  { %v895_v34 = vadd.f32 %v891_v54, %v853_v36  ;;  %v1242_v54 = vmul.f32 %v1241_v24, %v2448_v4 }
 0x246   :  { %v847_v39 = vpop.permute.xlu0 %846 }
 0x247   :  { %v852_v57 = vadd.f32 %v847_v39, %v2451_v1  ;;  %v1039_v39 = vstv %s2592_s17 }
 0x248   :  { %1372 = vrot.lane.b32.xlu1 %v1357_v58, %s1768_s7  ;;  %1344 = vrot.lane.b32.xlu2 %v1329_v5, %s1768_s7  ;;  %v1040_v5 = vmul.f32 %v1039_v39, %v2334_v19 }
 0x249   :  { %v894_v62 = vadd.f32 %v890_v50, %v852_v57 }
 0x24a   :  { %v949_v48 = vpop.permute.xlu2 %948  ;;  %v875_v2 = vpop.permute.xlu1 %874 }
 0x24b   :  { %v880_v45 = vadd.f32 %v875_v2, %v2455_v18  ;;  %v2544_v40 = vadd.f32 %v929_v33, %v894_v62  ;;  %v899_v18 = vmul.f32 %v897_v23, %v2236_v37  ;;  %v1413_v23 = vmul.f32 %v1411_v9, %v2521_v44 }
 0x24c   :  { %1370 = vrot.lane.b32.xlu0 %v1356_v46, %s1768_s7  ;;  %v1215_v62 = vmul.f32 %v1213_v7, %v2465_v12  ;;  %v1269_v9 = vstv %s2607_s1 }
 0x24d   :  { %v906_v1 = vadd.f32 %v902_v32, %v880_v45  ;;  %v1271_v32 = vmul.f32 %v1269_v9, %v2465_v12 }
 0x24e   :  { %v867_v55 = vpop.permute.xlu0 %866 }
 0x24f   :  { %v871_v15 = vadd.f32 %v867_v55, %v2475_v35  ;;  %v1132_v35 = vmul.f32 %v1131_v41, %v2334_v19  ;;  %v1025_v55 = vmul.f32 %v1023_v61, %v2362_v11 }
 0x250   :  { %1426 = vrot.lane.b32.xlu1 %v1412_v6, %s1769_s10  ;;  %1398 = vrot.lane.b32.xlu2 %v1384_v63, %s1769_s10 }
 0x251   :  { %v905_v53 = vadd.f32 %v899_v18, %v871_v15  ;;  %v1270_v15 = vmul.f32 %v1269_v9, %v2448_v4 }
 0x252   :  { %v975_v20 = vpop.permute.xlu2 %974  ;;  %v921_v29 = vpop.permute.xlu1 %920 }
 0x253   :  { %v2559_v16 = vadd.f32 %v921_v29, %v2479_v17  ;;  %v2562_v14 = vadd.f32 %v949_v48, %v905_v53  ;;  %v1035_v53 = vstv %s2614_s3 }
 0x254   :  { %1400 = vrot.lane.b32.xlu0 %v1385_v21, %s1769_s10  ;;  %v1323_v21 = vstv %s2621_s19 }
 0x255   :  { %v1324_v61 = vmul.f32 %v1323_v21, %v2498_v10 }
 0x256   :  { %v919_v37 = vpop.permute.xlu0 %918 }
 0x257   :  { %v924_v60 = vadd.f32 %v919_v37, %v2508_v49  ;;  %v1185_v49 = vstv %s2565_s13 }
 0x258   :  { %1140 = vrot.lane.b32.xlu1 %v1132_v35, %s1769_s10  ;;  %1428 = vrot.lane.b32.xlu2 %v1413_v23, %s1769_s10  ;;  %v1187_v56 = vmul.f32 %v1185_v49, %v2465_v12  ;;  %v1186_v31 = vmul.f32 %v1185_v49, %v2448_v4  ;;  %v1379_v49 = vstv %s2641_s5 }
 0x259   :  { %v980_v17 = vadd.f32 %v975_v20, %v924_v60  ;;  %v1351_v20 = vstv %s2618_s18  ;;  %v1036_v60 = vmul.f32 %v1035_v53, %v2334_v19 }
 0x25a   :  { %v987_v27 = vpop.permute.xlu2 %986  ;;  %v947_v25 = vpop.permute.xlu1 %946  ;;  %v1352_v23 = vmul.f32 %v1351_v20, %v2498_v10 }
 0x25b   :  { %v2582_v3 = vadd.f32 %v947_v25, %v2505_v30  ;;  %v2586_v0 = vadd.f32 %v1024_v22, %v980_v17  ;;  %v1027_v30 = vstv %s2573_s14  ;;  %v1325_v22 = vmul.f32 %v1323_v21, %v2521_v44 }
 0x25c   :  { %1114 = vrot.lane.b32.xlu0 %v1105_v38, %s1769_s10  ;;  %v1029_v8 = vmul.f32 %v1027_v30, %v2362_v11  ;;  %v1028_v2 = vmul.f32 %v1027_v30, %v2334_v19 }
 0x25e   :  { %v931_v13 = vpop.permute.xlu0 %930 }
 0x25f   :  { %v935_v28 = vadd.f32 %v931_v13, %v895_v34  ;;  %v1214_v34 = vmul.f32 %v1213_v7, %v2448_v4 }
 0x260   :  { %1196 = vrot.lane.b32.xlu1 %v1187_v56, %s1768_s7  ;;  %1142 = vrot.lane.b32.xlu2 %v1133_v26, %s1769_s10  ;;  %v1353_v56 = vmul.f32 %v1351_v20, %v2521_v44 }
 0x261   :  { %v991_v52 = vadd.f32 %v987_v27, %v935_v28  ;;  %v1041_v28 = vmul.f32 %v1039_v39, %v2362_v11 }
 0x262   :  { %v1013_v43 = vpop.permute.xlu2 %1012  ;;  %v959_v47 = vpop.permute.xlu1 %958 }
 0x263   :  { %v2600_v33 = vadd.f32 %v959_v47, %v2528_v59  ;;  %v2604_v36 = vadd.f32 %v1029_v8, %v991_v52  ;;  %v1380_v8 = vmul.f32 %v1379_v49, %v2498_v10  ;;  %v1407_v47 = vstv %s1646_s20 }
 0x264   :  { %1194 = vrot.lane.b32.xlu0 %v1186_v31, %s1768_s7  ;;  %v1165_v31 = vstv %s2659_s21  ;;  %v1409_v39 = vmul.f32 %v1407_v47, %v2521_v44 }
 0x266   :  { %v957_v51 = vpop.permute.xlu0 %956 }
 0x267   :  { %v962_v58 = vadd.f32 %v957_v51, %v906_v1  ;;  %v1243_v1 = vmul.f32 %v1241_v24, %v2465_v12 }
 0x268   :  { %1250 = vrot.lane.b32.xlu1 %v1242_v54, %s1769_s10  ;;  %1222 = vrot.lane.b32.xlu2 %v1214_v34, %s1768_s7 }
 0x269   :  { %v1018_v59 = vadd.f32 %v1013_v43, %v962_v58 }
 0x26a   :  { %v1059_v50 = vpop.permute.xlu2 %1058  ;;  %v985_v57 = vpop.permute.xlu1 %984 }
 0x26b   :  { %v990_v48 = vadd.f32 %v985_v57, %v2544_v40  ;;  %v2624_v46 = vadd.f32 %v1040_v5, %v1018_v59  ;;  %v1166_v57 = vmul.f32 %v1165_v31, %v2448_v4 }
 0x26c   :  { %1224 = vrot.lane.b32.xlu0 %v1215_v62, %s1768_s7 }
 0x26d   :  { %v2628_v45 = vadd.f32 %v1028_v2, %v990_v48  ;;  %v1161_v48 = vstv %s2676_s22 }
 0x26e   :  { %v977_v42 = vpop.permute.xlu0 %976 }
 0x26f   :  { %v981_v40 = vadd.f32 %v977_v42, %v2559_v16  ;;  %v1037_v16 = vmul.f32 %v1035_v53, %v2362_v11  ;;  %v1408_v11 = vmul.f32 %v1407_v47, %v2498_v10 }
 0x270   :  { %1280 = vrot.lane.b32.xlu1 %v1271_v32, %s1769_s10  ;;  %1252 = vrot.lane.b32.xlu2 %v1243_v1, %s1769_s10  ;;  %v1162_v32 = vmul.f32 %v1161_v48, %v2448_v4 }
 0x271   :  { %v1031_v6 = vadd.f32 %v1025_v55, %v981_v40 }
 0x272   :  { %v1085_v63 = vpop.permute.xlu2 %1084  ;;  %v1005_v18 = vpop.permute.xlu1 %1004 }
 0x273   :  { %v1009_v29 = vadd.f32 %v1005_v18, %v2562_v14  ;;  %v2644_v41 = vadd.f32 %v1059_v50, %v1031_v6  ;;  %v1177_v6 = vstv %s1627_s23 }
 0x274   :  { %1278 = vrot.lane.b32.xlu0 %v1270_v15, %s1769_s10  ;;  %v1178_v21 = vmul.f32 %v1177_v6, %v2448_v4 }
 0x275   :  { %v1043_v37 = vadd.f32 %v1037_v16, %v1009_v29 }
 0x276   :  { %v1003_v35 = vpop.permute.xlu0 %1002 }
 0x277   :  { %v1008_v14 = vadd.f32 %v1003_v35, %v2582_v3  ;;  %v1381_v3 = vmul.f32 %v1379_v49, %v2521_v44 }
 0x278   :  { %1360 = vrot.lane.b32.xlu1 %v1352_v23, %s1768_s7  ;;  %1332 = vrot.lane.b32.xlu2 %v1324_v61, %s1768_s7 }
 0x279   :  { %v1042_v17 = vadd.f32 %v1036_v60, %v1008_v14 }
 0x27a   :  { %v1097_v27 = vpop.permute.xlu2 %1096  ;;  %v1057_v25 = vpop.permute.xlu1 %1056 }
 0x27b   :  { %v1062_v38 = vadd.f32 %v1057_v25, %v2586_v0  ;;  %v2656_v13 = vadd.f32 %v1085_v63, %v1042_v17 }
 0x27c   :  { %1334 = vrot.lane.b32.xlu0 %v1325_v22, %s1768_s7 }
 0x27e   :  { %v1015_v19 = vpop.permute.xlu0 %1014 }
 0x27f   :  { %v1019_v26 = vadd.f32 %v1015_v19, %v2600_v33  ;;  %v1167_v33 = vmul.f32 %v1165_v31, %v2465_v12 }
 0x280   :  { %1390 = vrot.lane.b32.xlu1 %v1381_v3, %s1769_s10  ;;  %1362 = vrot.lane.b32.xlu2 %v1353_v56, %s1768_s7 }
 0x281   :  { %v1045_v0 = vadd.f32 %v1041_v28, %v1019_v26 }
 0x282   :  { %v1125_v30 = vpop.permute.xlu2 %1124  ;;  %v1069_v52 = vpop.permute.xlu1 %1068 }
 0x283   :  { %v1073_v43 = vadd.f32 %v1069_v52, %v2604_v36  ;;  %v1101_v1 = vadd.f32 %v1097_v27, %v1045_v0  ;;  %v1303_v27 = vstv %s1637_s24 }
 0x284   :  { %1388 = vrot.lane.b32.xlu0 %v1380_v8, %s1769_s10  ;;  %v1305_v49 = vmul.f32 %v1303_v27, %v2521_v44  ;;  %v1304_v0 = vmul.f32 %v1303_v27, %v2498_v10 }
 0x285   :  { %v1129_v24 = vadd.f32 %v1125_v30, %v1073_v43 }
 0x286   :  { %v1067_v7 = vpop.permute.xlu0 %1066 }
 0x287   :  { %v1171_v51 = vadd.f32 %v1167_v33, %v1129_v24  ;;  %v1072_v59 = vadd.f32 %v1067_v7, %v2628_v45  ;;  %v1179_v45 = vmul.f32 %v1177_v6, %v2465_v12 }
 0x288   :  { %1416 = vrot.lane.b32.xlu2 %v1408_v11, %s1769_s10 }
 0x28a   :  { %v1205_v54 = vpop.permute.xlu2 %1204  ;;  %v1095_v34 = vpop.permute.xlu1 %1094 }
 0x28b   :  { %v1100_v15 = vadd.f32 %v1095_v34, %v2624_v46 }
 0x28c   :  { %1418 = vrot.lane.b32.xlu0 %v1409_v39, %s1769_s10  ;;  %s2686_s10 = sld [smem:[#allocation10 + $0x1b]]  ;;  %v1173_v39 = vstv %s2699_s2 }
 0x28e   :  { %v1087_v36 = vpop.permute.xlu0 %1086 }
 0x28f   :  { %v1091_v58 = vadd.f32 %v1087_v36, %v1043_v37 }
 0x292   :  { %v1235_v5 = vpop.permute.xlu2 %1234  ;;  %v1123_v50 = vpop.permute.xlu1 %1122  ;;  %v1315_v23 = vstv %s2686_s10 }
 0x293   :  { %v1128_v62 = vadd.f32 %v1123_v50, %v1072_v59  ;;  %v1316_v14 = vmul.f32 %v1315_v23, %v2498_v10  ;;  %v1317_v11 = vmul.f32 %v1315_v23, %v2521_v44  ;;  %v1175_v50 = vmul.f32 %v1173_v39, %v2465_v12 }
 0x295   :  { %v1170_v2 = vadd.f32 %v1166_v57, %v1128_v62 }
 0x296   :  { %v1113_v9 = vpop.permute.xlu0 %1112 }
 0x297   :  { %v1118_v42 = vadd.f32 %v1113_v9, %v1062_v38  ;;  %v1210_v56 = vadd.f32 %v1205_v54, %v1170_v2 }
 0x299   :  { %v2684_v40 = vadd.f32 %v1162_v32, %v1118_v42 }
 0x29a   :  { %v1289_v55 = vpop.permute.xlu2 %1288  ;;  %v1153_v63 = vpop.permute.xlu1 %1152 }
 0x29b   :  { %v1157_v18 = vadd.f32 %v1153_v63, %v1101_v1 }
 0x29d   :  { %v1183_v53 = vadd.f32 %v1179_v45, %v1157_v18 }
 0x29e   :  { %v1151_v20 = vpop.permute.xlu0 %1150 }
 0x29f   :  { %v1156_v29 = vadd.f32 %v1151_v20, %v1100_v15  ;;  %v1239_v31 = vadd.f32 %v1235_v5, %v1183_v53  ;;  %v1174_v20 = vmul.f32 %v1173_v39, %v2448_v4 }
 0x2a1   :  { %v1182_v16 = vadd.f32 %v1178_v21, %v1156_v29 }
 0x2a2   :  { %v2691_v37 = vpop.permute.xlu2 %1344  ;;  %v1233_v35 = vpop.permute.xlu1 %1232 }
 0x2a3   :  { %v1238_v61 = vadd.f32 %v1233_v35, %v1182_v16 }
 0x2a5   :  { %v1294_v60 = vadd.f32 %v1289_v55, %v1238_v61 }
 0x2a6   :  { %v1207_v17 = vpop.permute.xlu0 %1206 }
 0x2a7   :  { %v1320_v22 = vadd.f32 %v1316_v14, %v1294_v60  ;;  %v1211_v25 = vadd.f32 %v1207_v17, %v1171_v51  ;;  %v1163_v14 = vmul.f32 %v1161_v48, %v2465_v12 }
 0x2aa   :  { %v1399_v46 = vpop.permute.xlu2 %1398  ;;  %v1263_v38 = vpop.permute.xlu1 %1262 }
 0x2ab   :  { %v1267_v19 = vadd.f32 %v1263_v38, %v1211_v25  ;;  %v1299_v25 = vstv %s1636_s25 }
 0x2ad   :  { %v2696_v3 = vadd.f32 %v1305_v49, %v1267_v19 }
 0x2ae   :  { %v1261_v26 = vpop.permute.xlu0 %1260 }
 0x2af   :  { %v1266_v28 = vadd.f32 %v1261_v26, %v1210_v56  ;;  %v1300_v56 = vmul.f32 %v1299_v25, %v2498_v10 }
 0x2b1   :  { %v1308_v30 = vadd.f32 %v1304_v0, %v1266_v28 }
 0x2b2   :  { %v1429_v52 = vpop.permute.xlu2 %1428  ;;  %v1343_v8 = vpop.permute.xlu1 %1342 }
 0x2b3   :  { %v1348_v43 = vadd.f32 %v1343_v8, %v1308_v30  ;;  %v1311_v30 = vstv %s1638_s4 }
 0x2b5   :  { %v1404_v47 = vadd.f32 %v1399_v46, %v1348_v43 }
 0x2b6   :  { %v1291_v24 = vpop.permute.xlu0 %1290 }
 0x2b7   :  { %v1434_v33 = vmul.f32 0.5, %v1404_v47  ;;  %v1295_v7 = vadd.f32 %v1291_v24, %v1239_v31  ;;  %v1349_v47 = vadd.f32 %v2691_v37, %v2696_v3  ;;  %v1313_v31 = vmul.f32 %v1311_v30, %v2521_v44 }
 0x2b9   :  { %1666 = vtanh.f32 %v1434_v33  ;;  %v1321_v51 = vadd.f32 %v1317_v11, %v1295_v7 }
 0x2ba   :  { %v1143_v54 = vpop.permute.xlu2 %1142  ;;  %v1373_v34 = vpop.permute.xlu1 %1372 }
 0x2bb   :  { %v1147_v36 = vadd.f32 %v1143_v54, %v1091_v58  ;;  %v1377_v59 = vadd.f32 %v1373_v34, %v1321_v51  ;;  %v1312_v54 = vmul.f32 %v1311_v30, %v2498_v10 }
 0x2bd   :  { %v1433_v57 = vadd.f32 %v1429_v52, %v1377_v59  ;;  %v1181_v62 = vadd.f32 %v1175_v50, %v1147_v36 }
 0x2be   :  { %v1371_v2 = vpop.permute.xlu0 %1370 }
 0x2bf   :  { %v1667_v9 = vpop.eup %1666  ;;  %v1476_v42 = vmul.f32 0.5, %v1433_v57  ;;  %v1376_v32 = vadd.f32 %v1371_v2, %v1320_v22 }
 0x2c0   :  { %v1440_v5 = vmul.f32 1.442695, %v1667_v9 }
 0x2c1   :  { %1668 = vtanh.f32 %v1476_v42 }
 0x2c2   :  { %1670 = vpow2.f32 %v1440_v5  ;;  %v1427_v1 = vpop.permute.xlu1 %1426  ;;  %v1223_v6 = vpop.permute.xlu2 %1222 }
 0x2c3   :  { %v1432_v55 = vadd.f32 %v1427_v1, %v1376_v32 }
 0x2c5   :  { %v1475_v63 = vmul.f32 0.5, %v1432_v55 }
 0x2c6   :  { %v1401_v45 = vpop.permute.xlu0 %1400 }
 0x2c7   :  { %v1669_v18 = vpop.eup %1668  ;;  %1672 = vtanh.f32 %v1475_v63  ;;  %v1405_v33 = vadd.f32 %v1401_v45, %v1349_v47  ;;  %v1648_v63 = vld [vmem:[%s2757_s0 + $0x31] sm:$0xff] }
 0x2c8   :  { %v1671_v58 = vpop.eup %1670  ;;  %v1483_v15 = vmul.f32 1.442695, %v1669_v18 }
 0x2c9   :  { %1446 = vrot.lane.b32.xlu1 %v1671_v58, %s1770_s9  ;;  %v1435_v34 = vmul.f32 0.5, %v1405_v33 }
 0x2ca   :  { %1674 = vpow2.f32 %v1483_v15  ;;  %v1141_v53 = vpop.permute.xlu1 %1140  ;;  %v1253_v23 = vpop.permute.xlu2 %1252 }
 0x2cb   :  { %v1146_v29 = vadd.f32 %v1141_v53, %v2656_v13  ;;  %v1301_v13 = vmul.f32 %v1299_v25, %v2521_v44 }
 0x2cd   :  { %v1673_v21 = vpop.eup %1672  ;;  %v1180_v16 = vadd.f32 %v1174_v20, %v1146_v29  ;;  %v1652_v29 = vld [vmem:[%s2757_s0 + $0x49] sm:$0xff] }
 0x2ce   :  { %v1481_v35 = vmul.f32 1.442695, %v1673_v21  ;;  %v1115_v61 = vpop.permute.xlu0 %1114 }
 0x2cf   :  { %v1119_v60 = vadd.f32 %v1115_v61, %v2644_v41  ;;  %v1228_v11 = vadd.f32 %v1223_v6, %v1180_v16  ;;  %v1653_v16 = vld [vmem:[%s2757_s0 + $0x51] sm:$0xff] }
 0x2d0   :  { %v1675_v17 = vpop.eup %1674  ;;  %1676 = vpow2.f32 %v1481_v35 }
 0x2d1   :  { %1489 = vrot.lane.b32.xlu1 %v1675_v17, %s1770_s9  ;;  %v1169_v22 = vadd.f32 %v1163_v14, %v1119_v60  ;;  %1678 = vtanh.f32 %v1435_v34  ;;  %v1649_v14 = vld [vmem:[%s2757_s0 + $0x39] sm:$0xff] }
 0x2d2   :  { %v1197_v27 = vpop.permute.xlu1 %1196  ;;  %v1333_v41 = vpop.permute.xlu2 %1332 }
 0x2d3   :  { %v1201_v4 = vadd.f32 %v1197_v27, %v1169_v22 }
 0x2d5   :  { %v1257_v46 = vadd.f32 %v1253_v23, %v1201_v4 }
 0x2d6   :  { %v1677_v38 = vpop.eup %1676  ;;  %v1195_v49 = vpop.permute.xlu0 %1194 }
 0x2d7   :  { %1487 = vrot.lane.b32.xlu0 %v1677_v38, %s1770_s9  ;;  %v1307_v19 = vadd.f32 %v1301_v13, %v1257_v46  ;;  %v1200_v12 = vadd.f32 %v1195_v49, %v2684_v40  ;;  %v1679_v3 = vpop.eup %1678 }
 0x2d8   :  { %v1442_v42 = vmul.f32 1.442695, %v1679_v3 }
 0x2da   :  { %v1251_v48 = vpop.permute.xlu1 %1250  ;;  %v1363_v8 = vpop.permute.xlu2 %1362  ;;  %1680 = vpow2.f32 %v1442_v42 }
 0x2db   :  { %v1256_v26 = vadd.f32 %v1251_v48, %v1200_v12 }
 0x2dd   :  { %v1306_v28 = vadd.f32 %v1300_v56, %v1256_v26 }
 0x2de   :  { %v1225_v0 = vpop.permute.xlu0 %1224 }
 0x2df   :  { %v1229_v52 = vadd.f32 %v1225_v0, %v1181_v62  ;;  %v1338_v9 = vadd.f32 %v1333_v41, %v1306_v28 }
 0x2e0   :  { %v1681_v32 = vpop.eup %1680 }
 0x2e2   :  { %v1281_v43 = vpop.permute.xlu1 %1280  ;;  %v1417_v50 = vpop.permute.xlu2 %1416 }
 0x2e3   :  { %v1285_v24 = vadd.f32 %v1281_v43, %v1229_v52 }
 0x2e5   :  { %v1319_v7 = vadd.f32 %v1313_v31, %v1285_v24 }
 0x2e6   :  { %v1279_v40 = vpop.permute.xlu0 %1278 }
 0x2e7   :  { %v1284_v51 = vadd.f32 %v1279_v40, %v1228_v11  ;;  %v1367_v55 = vadd.f32 %v1363_v8, %v1319_v7 }
 0x2e9   :  { %v1318_v39 = vadd.f32 %v1312_v54, %v1284_v51 }
 0x2ea   :  { %v1361_v36 = vpop.permute.xlu1 %1360 }
 0x2eb   :  { %v1366_v59 = vadd.f32 %v1361_v36, %v1318_v39 }
 0x2ed   :  { %v1422_v57 = vadd.f32 %v1417_v50, %v1366_v59 }
 0x2ee   :  { %v1335_v62 = vpop.permute.xlu0 %1334 }
 0x2ef   :  { %1497 = vrot.lane.b32.xlu1 %v1422_v57, %s1770_s9  ;;  %v1339_v37 = vadd.f32 %v1335_v62, %v1307_v19 }
 0x2f2   :  { %v1391_v44 = vpop.permute.xlu1 %1390 }
 0x2f3   :  { %v1395_v2 = vadd.f32 %v1391_v44, %v1339_v37 }
 0x2f5   :  { %1458 = vrot.lane.b32.xlu0 %v1395_v2, %s1770_s9 }
 0x2f6   :  { %v1389_v5 = vpop.permute.xlu0 %1388 }
 0x2f7   :  { %v1394_v10 = vadd.f32 %v1389_v5, %v1338_v9 }
 0x2f9   :  { %1456 = vrot.lane.b32.xlu2 %v1394_v10, %s1770_s9 }
 0x2fe   :  { %v1419_v1 = vpop.permute.xlu0 %1418 }
 0x2ff   :  { %v1423_v6 = vadd.f32 %v1419_v1, %v1367_v55 }
 0x301   :  { %1448 = vrot.lane.b32.xlu2 %v1681_v32, %s1770_s9 }
 0x309   :  { %1499 = vrot.lane.b32.xlu2 %v1423_v6, %s1770_s9 }
 0x33b   :  { %v1447_v45 = vpop.permute.xlu1 %1446 }
 0x33c   :  { %v1452_v18 = vmul.f32 %v1648_v63, %v1447_v45 }
 0x343   :  { %v1490_v53 = vpop.permute.xlu1 %1489 }
 0x344   :  { %v1494_v61 = vmul.f32 %v1653_v16, %v1490_v53 }
 0x349   :  { %v1488_v21 = vpop.permute.xlu0 %1487 }
 0x34a   :  { %v1493_v35 = vmul.f32 %v1652_v29, %v1488_v21 }
 0x353   :  { %v1457_v58 = vpop.permute.xlu2 %1456 }
 0x354   :  { %v1462_v15 = vadd.f32 %v1457_v58, %v1452_v18 }
 0x356   :  { %1466 = vrot.lane.b32.xlu0 %v1462_v15, %s1768_s7 }
 0x35b   :  { %v1449_v20 = vpop.permute.xlu2 %1448 }
 0x35c   :  { %v1453_v27 = vmul.f32 %v1649_v14, %v1449_v20 }
 0x361   :  { %v1498_v23 = vpop.permute.xlu1 %1497 }
 0x362   :  { %v1503_v60 = vadd.f32 %v1498_v23, %v1493_v35 }
 0x363   :  { %v1500_v17 = vpop.permute.xlu2 %1499 }
 0x364   :  { %v1504_v22 = vadd.f32 %v1500_v17, %v1494_v61  ;;  %1507 = vrot.lane.b32.xlu2 %v1503_v60, %s1768_s7 }
 0x366   :  { %1509 = vrot.lane.b32.xlu0 %v1504_v22, %s1768_s7 }
 0x367   :  { %v1459_v25 = vpop.permute.xlu0 %1458 }
 0x368   :  { %v1463_v4 = vadd.f32 %v1459_v25, %v1453_v27 }
 0x36a   :  { %1468 = vrot.lane.b32.xlu1 %v1463_v4, %s1768_s7 }
 0x3be   :  { %v1508_v46 = vpop.permute.xlu2 %1507 }
 0x3bf   :  { %1654 = vst.msk [vmem:[%s2765_s8 + $0x30] sm:$0xff] %vm554_vm2, %v1508_v46 }
 0x3c8   :  { %v1467_v13 = vpop.permute.xlu0 %1466 }
 0x3c9   :  { %1650 = vst.msk [vmem:[%s2765_s8 + $0x20] sm:$0xff] %vm554_vm2, %v1467_v13 }
 0x3d8   :  { %v1510_v38 = vpop.permute.xlu0 %1509 }
 0x3d9   :  { %1655 = vst.msk [vmem:[%s2765_s8 + $0x38] sm:$0xff] %vm554_vm2, %v1510_v38 }
 0x3dc   :  { %v1469_v49 = vpop.permute.xlu1 %1468 }
 0x3dd   :  { %1651 = vst.msk [vmem:[%s2765_s8 + $0x28] sm:$0xff] %vm554_vm2, %v1469_v49 }
 0x3de   :  { %1520 = vsyncpa [#allocation4], 1 }
 0x3df   :  { %1521 = vsyncpa [#allocation6], 1 }
 0x3e0   :  { %1522 = vsyncpa [#allocation9], 1 }
 0x3e1   :  { %1523 = vsyncpa [#allocation12], 1 }

</bundles_post_ra>
